<compile_context>
chip_gen: v7x
topology: tpu7x:2x2x1
jax: 0.10.0
libtpu: 0.0.40
codegen_flags: <defaults>
</compile_context>

<pallas_src>
import functools
import math

import jax
import jax.numpy as jnp
from jax import lax
from jax.experimental import pallas as pl
from jax.experimental.pallas import tpu as pltpu


# -----------------------------------------------------------------------------
# Fused DataAxisAttention kernel (one grid step == block_b batch elements)
# -----------------------------------------------------------------------------
def _layernorm(x, g, b, eps=1e-5):
    mean = jnp.mean(x, axis=-1, keepdims=True)
    var = jnp.mean(jnp.square(x - mean), axis=-1, keepdims=True)
    return (x - mean) * lax.rsqrt(var + eps) * g + b


def _daa_kernel(hm_ref, wqkv_ref, wo_ref, w1_ref, w2_ref,
                bqkv_ref, b1_ref, vec_ref, hp_ref, *attn_refs,
                n_heads, with_attn):
    Bt, L, H = hm_ref.shape
    hd = H // n_heads
    scale = 1.0 / math.sqrt(hd)
    R = Bt * L

    # Packed H-wide vectors: [out_proj_b, mlp_b2, ln1_g, ln1_b, ln2_g, ln2_b]
    vec = vec_ref[...]
    bo, b2 = vec[0:1], vec[1:2]
    ln1g, ln1b = vec[2:3], vec[3:4]
    ln2g, ln2b = vec[4:5], vec[5:6]

    rows = hm_ref[...].reshape(R, H)                       # (R, H) lane-dense

    # ---- fused QKV projection: one (R, H) @ (H, 3H) matmul ------------------
    qkv = jnp.dot(rows, wqkv_ref[...],
                  preferred_element_type=jnp.float32) + bqkv_ref[...]  # (R, 3H)

    # ---- per-(batch, head) attention from static slices of qkv --------------
    ctx_rows = []
    for b in range(Bt):
        r0 = b * L
        ctx_parts = []
        if with_attn:
            p_sum = jnp.zeros((L, L), jnp.float32)
        for n in range(n_heads):
            c0 = n * hd
            qn = qkv[r0:r0 + L, c0:c0 + hd]                 # (L, hd)
            kn = qkv[r0:r0 + L, H + c0:H + c0 + hd]
            vn = qkv[r0:r0 + L, 2 * H + c0:2 * H + c0 + hd]
            s = lax.dot_general(qn, kn, (((1,), (1,)), ((), ())),
                                preferred_element_type=jnp.float32) * scale
            s = s - jnp.max(s, axis=-1, keepdims=True)
            e = jnp.exp(s)
            p = e / jnp.sum(e, axis=-1, keepdims=True)      # exact softmax
            ctx_parts.append(jnp.dot(p, vn, preferred_element_type=jnp.float32))
            if with_attn:
                p_sum = p_sum + p
        ctx_rows.append(jnp.concatenate(ctx_parts, axis=-1))   # (L, H) lane-dense
        if with_attn:
            attn_refs[0][b] = p_sum * (1.0 / n_heads)           # head-averaged
    ctx = jnp.concatenate(ctx_rows, axis=0)                     # (R, H)

    # ---- fused head-merge + out-proj: one (R, H) @ (H, H) matmul ------------
    attn_out = jnp.dot(ctx, wo_ref[...],
                       preferred_element_type=jnp.float32) + bo

    # ---- residual / LayerNorm / MLP (Dropout = identity at inference) -------
    hm_hat = _layernorm(rows + attn_out, ln1g, ln1b)
    z = rows + hm_hat
    h1 = jnp.maximum(
        jnp.dot(z, w1_ref[...], preferred_element_type=jnp.float32) + b1_ref[...],
        0.0)
    mlp_o = jnp.dot(h1, w2_ref[...], preferred_element_type=jnp.float32) + b2
    hp = jnp.tanh(z + mlp_o)
    hp = _layernorm(hm_hat + hp, ln2g, ln2b)

    hp_ref[...] = hp.reshape(Bt, L, H)


def _const_spec(shape):
    nd = len(shape)
    return pl.BlockSpec(shape, lambda i: (0,) * nd)


def data_axis_attention(hm, params, *, n_heads, rt_attn=False, block_b=None):
    """hm: (B, L, H) float32. Returns (hp, dx_attn or None) like the torch module."""
    B, L, H = hm.shape
    if block_b is None:
        # Fold enough batch rows per grid step to feed the MXU, capped at B.
        block_b = max(1, min(B, 256 // max(L, 1)))
    block_b = min(block_b, B)
    while B % block_b:
        block_b -= 1
    grid = (B // block_b,)

    kern = functools.partial(_daa_kernel, n_heads=n_heads, with_attn=rt_attn)
    args = (hm, params["w_qkv"], params["w_o"], params["w1"], params["w2"],
            params["b_qkv"], params["b1"], params["vec"])
    in_specs = ([pl.BlockSpec((block_b, L, H), lambda i: (i, 0, 0))]
                + [_const_spec(a.shape) for a in args[1:]])

    hp_shape = jax.ShapeDtypeStruct((B, L, H), jnp.float32)
    hp_spec = pl.BlockSpec((block_b, L, H), lambda i: (i, 0, 0))
    if rt_attn:
        out_shape = (hp_shape, jax.ShapeDtypeStruct((B, L, L), jnp.float32))
        out_specs = (hp_spec, pl.BlockSpec((block_b, L, L), lambda i: (i, 0, 0)))
    else:
        out_shape = hp_shape
        out_specs = hp_spec

    out = pl.pallas_call(
        kern,
        grid=grid,
        out_shape=out_shape,
        in_specs=in_specs,
        out_specs=out_specs,
        compiler_params=pltpu.CompilerParams(
            dimension_semantics=("parallel",),
            vmem_limit_bytes=32 * 1024 * 1024),
    )(*args)

    if rt_attn:
        hp, dx_attn = out
        return hp, dx_attn
    return out, None


# -----------------------------------------------------------------------------
# Parameter re-layout from torch-style weights to kernel-friendly layout
# -----------------------------------------------------------------------------
def make_kernel_params(raw, *, n_heads):
    H = raw["out_proj_w"].shape[0]
    vec = jnp.stack([raw["out_proj_b"], raw["mlp_b2"],
                     raw["ln1_g"], raw["ln1_b"],
                     raw["ln2_g"], raw["ln2_b"]], axis=0)   # (6, H)
    return {
        "w_qkv": jnp.transpose(raw["in_proj_w"], (1, 0)),   # (H, 3H)
        "w_o": jnp.transpose(raw["out_proj_w"], (1, 0)),    # (H, H)
        "w1": jnp.transpose(raw["mlp_w1"], (1, 0)),         # (H, 4H)
        "w2": jnp.transpose(raw["mlp_w2"], (1, 0)),         # (4H, H)
        "b_qkv": raw["in_proj_b"].reshape(1, 3 * H),
        "b1": raw["mlp_b1"].reshape(1, 4 * H),
        "vec": vec,
    }


# -----------------------------------------------------------------------------
# Plain-JAX reference (direct transliteration of the torch module, eval mode)
# -----------------------------------------------------------------------------
def reference_forward(hm, raw, n_heads):
    B, L, H = hm.shape
    hd = H // n_heads
    wq, wk, wv = (raw["in_proj_w"][:H], raw["in_proj_w"][H:2 * H],
                  raw["in_proj_w"][2 * H:])
    bq, bk, bv = (raw["in_proj_b"][:H], raw["in_proj_b"][H:2 * H],
                  raw["in_proj_b"][2 * H:])

    def heads(x):                                    # (B,L,H) -> (B,nh,L,hd)
        return x.reshape(B, L, n_heads, hd).transpose(0, 2, 1, 3)

    q = heads(hm @ wq.T + bq)
    k = heads(hm @ wk.T + bk)
    v = heads(hm @ wv.T + bv)
    s = jnp.einsum('bnqd,bnkd->bnqk', q, k) / math.sqrt(hd)
    p = jax.nn.softmax(s, axis=-1)
    ctx = jnp.einsum('bnqk,bnkd->bnqd', p, v)
    cat = ctx.transpose(0, 2, 1, 3).reshape(B, L, H)
    attn_out = cat @ raw["out_proj_w"].T + raw["out_proj_b"]

    def ln(x, g, b):
        m = x.mean(-1, keepdims=True)
        var = ((x - m) ** 2).mean(-1, keepdims=True)
        return (x - m) / jnp.sqrt(var + 1e-5) * g + b

    hm_hat = ln(hm + attn_out, raw["ln1_g"], raw["ln1_b"])
    z = hm + hm_hat
    mlp = (jnp.maximum(z @ raw["mlp_w1"].T + raw["mlp_b1"], 0.0)
           @ raw["mlp_w2"].T + raw["mlp_b2"])
    hp = jnp.tanh(z + mlp)
    hp = ln(hm_hat + hp, raw["ln2_g"], raw["ln2_b"])
    return hp, p.mean(axis=1)


if __name__ == "__main__":
    # Small shapes consistent with the module: batch=2, seq(len)=8, hidden=32,
    # n_heads=4 (head_dim=8).
    B, L, H, NH = 2, 8, 32, 4

    key = jax.random.PRNGKey(0)
    ks = jax.random.split(key, 10)

    def init(k, shape, scale=0.1):
        return jax.random.normal(k, shape, dtype=jnp.float32) * scale

    raw = {
        "in_proj_w": init(ks[0], (3 * H, H)),
        "in_proj_b": init(ks[1], (3 * H,)),
        "out_proj_w": init(ks[2], (H, H)),
        "out_proj_b": init(ks[3], (H,)),
        "mlp_w1": init(ks[4], (4 * H, H)),
        "mlp_b1": init(ks[5], (4 * H,)),
        "mlp_w2": init(ks[6], (H, 4 * H)),
        "mlp_b2": init(ks[7], (H,)),
        "ln1_g": jnp.ones((H,), jnp.float32), "ln1_b": jnp.zeros((H,), jnp.float32),
        "ln2_g": jnp.ones((H,), jnp.float32), "ln2_b": jnp.zeros((H,), jnp.float32),
    }
    params = make_kernel_params(raw, n_heads=NH)

    hm = init(ks[8], (B, L, H), scale=1.0)

    # rt_attn=True path (kernel variant with attention-weights output).
    hp, dx_attn = data_axis_attention(hm, params, n_heads=NH, rt_attn=True)
    jax.block_until_ready((hp, dx_attn))
    assert hp.shape == (B, L, H)
    assert dx_attn.shape == (B, L, L)
    assert bool(jnp.all(jnp.isfinite(hp)))
    assert bool(jnp.all(jnp.isfinite(dx_attn)))

    # rt_attn=False path (no attention output computed or written).
    hp2, none_attn = data_axis_attention(hm, params, n_heads=NH, rt_attn=False)
    jax.block_until_ready(hp2)
    assert none_attn is None
    assert hp2.shape == (B, L, H)

    # Cross-check against the plain-JAX transliteration of the torch forward.
    hp_ref, dx_ref = reference_forward(hm, raw, NH)
    assert float(jnp.max(jnp.abs(hp - hp_ref))) < 5e-3
    assert float(jnp.max(jnp.abs(hp2 - hp_ref))) < 5e-3
    assert float(jnp.max(jnp.abs(dx_attn - dx_ref))) < 5e-3
    # dx_attn rows must be proper distributions (exact softmax denominator).
    assert float(jnp.max(jnp.abs(jnp.sum(dx_attn, axis=-1) - 1.0))) < 1e-5

    print("KERNEL_OK")
</pallas_src>

<mosaic_0001>
module attributes {stable_mosaic.version = 11 : i64} {
  func.func @_daa_kernel(%arg0: i32, %arg1: memref<2x8x32xf32, #tpu.memory_space<vmem>>, %arg2: memref<32x96xf32, #tpu.memory_space<vmem>>, %arg3: memref<32x32xf32, #tpu.memory_space<vmem>>, %arg4: memref<32x128xf32, #tpu.memory_space<vmem>>, %arg5: memref<128x32xf32, #tpu.memory_space<vmem>>, %arg6: memref<1x96xf32, #tpu.memory_space<vmem>>, %arg7: memref<1x128xf32, #tpu.memory_space<vmem>>, %arg8: memref<6x32xf32, #tpu.memory_space<vmem>>, %arg9: memref<2x8x32xf32, #tpu.memory_space<vmem>>, %arg10: memref<2x8x8xf32, #tpu.memory_space<vmem>>) attributes {dimension_semantics = [#tpu.dimension_semantics<parallel>], iteration_bounds = array<i64: 1>, scalar_prefetch = 0 : i64, scratch_operands = 0 : i64, tpu.core_type = #tpu.core_type<tc>, window_params = [{transform_indices = @transform_0, window_bounds = array<i64: 2, 8, 32>}, {pipeline_mode = #tpu.pipeline_mode<synchronous>, transform_indices = @transform_1, window_bounds = array<i64: 32, 96>}, {pipeline_mode = #tpu.pipeline_mode<synchronous>, transform_indices = @transform_2, window_bounds = array<i64: 32, 32>}, {pipeline_mode = #tpu.pipeline_mode<synchronous>, transform_indices = @transform_3, window_bounds = array<i64: 32, 128>}, {pipeline_mode = #tpu.pipeline_mode<synchronous>, transform_indices = @transform_4, window_bounds = array<i64: 128, 32>}, {pipeline_mode = #tpu.pipeline_mode<synchronous>, transform_indices = @transform_5, window_bounds = array<i64: 1, 96>}, {pipeline_mode = #tpu.pipeline_mode<synchronous>, transform_indices = @transform_6, window_bounds = array<i64: 1, 128>}, {pipeline_mode = #tpu.pipeline_mode<synchronous>, transform_indices = @transform_7, window_bounds = array<i64: 6, 32>}, {transform_indices = @transform_8, window_bounds = array<i64: 2, 8, 32>}, {transform_indices = @transform_9, window_bounds = array<i64: 2, 8, 8>}]} {
    %c0 = arith.constant 0 : index
    %c0_0 = arith.constant 0 : index
    %0 = vector.load %arg8[%c0, %c0_0] : memref<6x32xf32, #tpu.memory_space<vmem>>, vector<6x32xf32>
    %1 = vector.extract_strided_slice %0 {offsets = [0, 0], sizes = [1, 32], strides = [1, 1]} : vector<6x32xf32> to vector<1x32xf32>
    %2 = vector.extract_strided_slice %0 {offsets = [1, 0], sizes = [1, 32], strides = [1, 1]} : vector<6x32xf32> to vector<1x32xf32>
    %3 = vector.extract_strided_slice %0 {offsets = [2, 0], sizes = [1, 32], strides = [1, 1]} : vector<6x32xf32> to vector<1x32xf32>
    %4 = vector.extract_strided_slice %0 {offsets = [3, 0], sizes = [1, 32], strides = [1, 1]} : vector<6x32xf32> to vector<1x32xf32>
    %5 = vector.extract_strided_slice %0 {offsets = [4, 0], sizes = [1, 32], strides = [1, 1]} : vector<6x32xf32> to vector<1x32xf32>
    %6 = vector.extract_strided_slice %0 {offsets = [5, 0], sizes = [1, 32], strides = [1, 1]} : vector<6x32xf32> to vector<1x32xf32>
    %c0_1 = arith.constant 0 : index
    %c0_2 = arith.constant 0 : index
    %c0_3 = arith.constant 0 : index
    %7 = vector.load %arg1[%c0_1, %c0_2, %c0_3] : memref<2x8x32xf32, #tpu.memory_space<vmem>>, vector<2x8x32xf32>
    %8 = vector.shape_cast %7 : vector<2x8x32xf32> to vector<16x32xf32>
    %c0_4 = arith.constant 0 : index
    %c0_5 = arith.constant 0 : index
    %9 = vector.load %arg2[%c0_4, %c0_5] : memref<32x96xf32, #tpu.memory_space<vmem>>, vector<32x96xf32>
    %cst = arith.constant dense<0.000000e+00> : vector<16x96xf32>
    %10 = tpu.matmul %8, %9, %cst {dimension_numbers = #tpu.dot_dimension_numbers<[1], [0], [0], [1], [0, 0, 1, 1], [], []>} : vector<16x32xf32>, vector<32x96xf32>, vector<16x96xf32> -> vector<16x96xf32>
    %c0_6 = arith.constant 0 : index
    %c0_7 = arith.constant 0 : index
    %11 = vector.load %arg6[%c0_6, %c0_7] : memref<1x96xf32, #tpu.memory_space<vmem>>, vector<1x96xf32>
    %12 = vector.broadcast %11 : vector<1x96xf32> to vector<16x96xf32>
    %13 = arith.addf %10, %12 : vector<16x96xf32>
    %cst_8 = arith.constant 0.000000e+00 : f32
    %14 = vector.broadcast %cst_8 : f32 to vector<8x8xf32>
    %15 = vector.extract_strided_slice %13 {offsets = [0, 0], sizes = [8, 8], strides = [1, 1]} : vector<16x96xf32> to vector<8x8xf32>
    %16 = vector.extract_strided_slice %13 {offsets = [0, 32], sizes = [8, 8], strides = [1, 1]} : vector<16x96xf32> to vector<8x8xf32>
    %17 = vector.extract_strided_slice %13 {offsets = [0, 64], sizes = [8, 8], strides = [1, 1]} : vector<16x96xf32> to vector<8x8xf32>
    %cst_9 = arith.constant dense<0.000000e+00> : vector<8x8xf32>
    %18 = tpu.matmul %15, %16, %cst_9 {dimension_numbers = #tpu.dot_dimension_numbers<[1], [1], [0], [0], [0, 0, 1, 0], [], []>} : vector<8x8xf32>, vector<8x8xf32>, vector<8x8xf32> -> vector<8x8xf32>
    %cst_10 = arith.constant 0.353553385 : f32
    %19 = vector.broadcast %cst_10 : f32 to vector<8x8xf32>
    %20 = arith.mulf %18, %19 : vector<8x8xf32>
    %cst_11 = arith.constant dense<0xFF800000> : vector<8xf32>
    %21 = vector.multi_reduction <maximumf>, %20, %cst_11 [1] : vector<8x8xf32> to vector<8xf32>
    %22 = vector.shape_cast %21 : vector<8xf32> to vector<8x1xf32>
    %23 = vector.broadcast %22 : vector<8x1xf32> to vector<8x8xf32>
    %24 = arith.subf %20, %23 : vector<8x8xf32>
    %25 = math.exp %24 : vector<8x8xf32>
    %cst_12 = arith.constant dense<0.000000e+00> : vector<8xf32>
    %26 = vector.multi_reduction <add>, %25, %cst_12 [1] : vector<8x8xf32> to vector<8xf32>
    %27 = vector.shape_cast %26 : vector<8xf32> to vector<8x1xf32>
    %28 = vector.broadcast %27 : vector<8x1xf32> to vector<8x8xf32>
    %29 = arith.divf %25, %28 : vector<8x8xf32>
    %cst_13 = arith.constant dense<0.000000e+00> : vector<8x8xf32>
    %30 = tpu.matmul %29, %17, %cst_13 {dimension_numbers = #tpu.dot_dimension_numbers<[1], [0], [0], [1], [0, 0, 1, 1], [], []>} : vector<8x8xf32>, vector<8x8xf32>, vector<8x8xf32> -> vector<8x8xf32>
    %31 = arith.addf %14, %29 : vector<8x8xf32>
    %32 = vector.extract_strided_slice %13 {offsets = [0, 8], sizes = [8, 8], strides = [1, 1]} : vector<16x96xf32> to vector<8x8xf32>
    %33 = vector.extract_strided_slice %13 {offsets = [0, 40], sizes = [8, 8], strides = [1, 1]} : vector<16x96xf32> to vector<8x8xf32>
    %34 = vector.extract_strided_slice %13 {offsets = [0, 72], sizes = [8, 8], strides = [1, 1]} : vector<16x96xf32> to vector<8x8xf32>
    %cst_14 = arith.constant dense<0.000000e+00> : vector<8x8xf32>
    %35 = tpu.matmul %32, %33, %cst_14 {dimension_numbers = #tpu.dot_dimension_numbers<[1], [1], [0], [0], [0, 0, 1, 0], [], []>} : vector<8x8xf32>, vector<8x8xf32>, vector<8x8xf32> -> vector<8x8xf32>
    %cst_15 = arith.constant 0.353553385 : f32
    %36 = vector.broadcast %cst_15 : f32 to vector<8x8xf32>
    %37 = arith.mulf %35, %36 : vector<8x8xf32>
    %cst_16 = arith.constant dense<0xFF800000> : vector<8xf32>
    %38 = vector.multi_reduction <maximumf>, %37, %cst_16 [1] : vector<8x8xf32> to vector<8xf32>
    %39 = vector.shape_cast %38 : vector<8xf32> to vector<8x1xf32>
    %40 = vector.broadcast %39 : vector<8x1xf32> to vector<8x8xf32>
    %41 = arith.subf %37, %40 : vector<8x8xf32>
    %42 = math.exp %41 : vector<8x8xf32>
    %cst_17 = arith.constant dense<0.000000e+00> : vector<8xf32>
    %43 = vector.multi_reduction <add>, %42, %cst_17 [1] : vector<8x8xf32> to vector<8xf32>
    %44 = vector.shape_cast %43 : vector<8xf32> to vector<8x1xf32>
    %45 = vector.broadcast %44 : vector<8x1xf32> to vector<8x8xf32>
    %46 = arith.divf %42, %45 : vector<8x8xf32>
    %cst_18 = arith.constant dense<0.000000e+00> : vector<8x8xf32>
    %47 = tpu.matmul %46, %34, %cst_18 {dimension_numbers = #tpu.dot_dimension_numbers<[1], [0], [0], [1], [0, 0, 1, 1], [], []>} : vector<8x8xf32>, vector<8x8xf32>, vector<8x8xf32> -> vector<8x8xf32>
    %48 = arith.addf %31, %46 : vector<8x8xf32>
    %49 = vector.extract_strided_slice %13 {offsets = [0, 16], sizes = [8, 8], strides = [1, 1]} : vector<16x96xf32> to vector<8x8xf32>
    %50 = vector.extract_strided_slice %13 {offsets = [0, 48], sizes = [8, 8], strides = [1, 1]} : vector<16x96xf32> to vector<8x8xf32>
    %51 = vector.extract_strided_slice %13 {offsets = [0, 80], sizes = [8, 8], strides = [1, 1]} : vector<16x96xf32> to vector<8x8xf32>
    %cst_19 = arith.constant dense<0.000000e+00> : vector<8x8xf32>
    %52 = tpu.matmul %49, %50, %cst_19 {dimension_numbers = #tpu.dot_dimension_numbers<[1], [1], [0], [0], [0, 0, 1, 0], [], []>} : vector<8x8xf32>, vector<8x8xf32>, vector<8x8xf32> -> vector<8x8xf32>
    %cst_20 = arith.constant 0.353553385 : f32
    %53 = vector.broadcast %cst_20 : f32 to vector<8x8xf32>
    %54 = arith.mulf %52, %53 : vector<8x8xf32>
    %cst_21 = arith.constant dense<0xFF800000> : vector<8xf32>
    %55 = vector.multi_reduction <maximumf>, %54, %cst_21 [1] : vector<8x8xf32> to vector<8xf32>
    %56 = vector.shape_cast %55 : vector<8xf32> to vector<8x1xf32>
    %57 = vector.broadcast %56 : vector<8x1xf32> to vector<8x8xf32>
    %58 = arith.subf %54, %57 : vector<8x8xf32>
    %59 = math.exp %58 : vector<8x8xf32>
    %cst_22 = arith.constant dense<0.000000e+00> : vector<8xf32>
    %60 = vector.multi_reduction <add>, %59, %cst_22 [1] : vector<8x8xf32> to vector<8xf32>
    %61 = vector.shape_cast %60 : vector<8xf32> to vector<8x1xf32>
    %62 = vector.broadcast %61 : vector<8x1xf32> to vector<8x8xf32>
    %63 = arith.divf %59, %62 : vector<8x8xf32>
    %cst_23 = arith.constant dense<0.000000e+00> : vector<8x8xf32>
    %64 = tpu.matmul %63, %51, %cst_23 {dimension_numbers = #tpu.dot_dimension_numbers<[1], [0], [0], [1], [0, 0, 1, 1], [], []>} : vector<8x8xf32>, vector<8x8xf32>, vector<8x8xf32> -> vector<8x8xf32>
    %65 = arith.addf %48, %63 : vector<8x8xf32>
    %66 = vector.extract_strided_slice %13 {offsets = [0, 24], sizes = [8, 8], strides = [1, 1]} : vector<16x96xf32> to vector<8x8xf32>
    %67 = vector.extract_strided_slice %13 {offsets = [0, 56], sizes = [8, 8], strides = [1, 1]} : vector<16x96xf32> to vector<8x8xf32>
    %68 = vector.extract_strided_slice %13 {offsets = [0, 88], sizes = [8, 8], strides = [1, 1]} : vector<16x96xf32> to vector<8x8xf32>
    %cst_24 = arith.constant dense<0.000000e+00> : vector<8x8xf32>
    %69 = tpu.matmul %66, %67, %cst_24 {dimension_numbers = #tpu.dot_dimension_numbers<[1], [1], [0], [0], [0, 0, 1, 0], [], []>} : vector<8x8xf32>, vector<8x8xf32>, vector<8x8xf32> -> vector<8x8xf32>
    %cst_25 = arith.constant 0.353553385 : f32
    %70 = vector.broadcast %cst_25 : f32 to vector<8x8xf32>
    %71 = arith.mulf %69, %70 : vector<8x8xf32>
    %cst_26 = arith.constant dense<0xFF800000> : vector<8xf32>
    %72 = vector.multi_reduction <maximumf>, %71, %cst_26 [1] : vector<8x8xf32> to vector<8xf32>
    %73 = vector.shape_cast %72 : vector<8xf32> to vector<8x1xf32>
    %74 = vector.broadcast %73 : vector<8x1xf32> to vector<8x8xf32>
    %75 = arith.subf %71, %74 : vector<8x8xf32>
    %76 = math.exp %75 : vector<8x8xf32>
    %cst_27 = arith.constant dense<0.000000e+00> : vector<8xf32>
    %77 = vector.multi_reduction <add>, %76, %cst_27 [1] : vector<8x8xf32> to vector<8xf32>
    %78 = vector.shape_cast %77 : vector<8xf32> to vector<8x1xf32>
    %79 = vector.broadcast %78 : vector<8x1xf32> to vector<8x8xf32>
    %80 = arith.divf %76, %79 : vector<8x8xf32>
    %cst_28 = arith.constant dense<0.000000e+00> : vector<8x8xf32>
    %81 = tpu.matmul %80, %68, %cst_28 {dimension_numbers = #tpu.dot_dimension_numbers<[1], [0], [0], [1], [0, 0, 1, 1], [], []>} : vector<8x8xf32>, vector<8x8xf32>, vector<8x8xf32> -> vector<8x8xf32>
    %82 = arith.addf %65, %80 : vector<8x8xf32>
    %83 = tpu.concatenate %30, %47, %64, %81 in 1 : vector<8x8xf32>, vector<8x8xf32>, vector<8x8xf32>, vector<8x8xf32> -> vector<8x32xf32>
    %cst_29 = arith.constant 2.500000e-01 : f32
    %84 = vector.broadcast %cst_29 : f32 to vector<8x8xf32>
    %85 = arith.mulf %82, %84 : vector<8x8xf32>
    %c0_30 = arith.constant 0 : index
    %c0_31 = arith.constant 0 : index
    %c0_32 = arith.constant 0 : index
    %86 = vector.load %arg10[%c0_30, %c0_31, %c0_32] : memref<2x8x8xf32, #tpu.memory_space<vmem>>, vector<1x8x8xf32>
    %87 = vector.shape_cast %86 : vector<1x8x8xf32> to vector<8x8xf32>
    %88 = vector.shape_cast %85 : vector<8x8xf32> to vector<1x8x8xf32>
    tpu.vector_store %arg10[%c0_30, %c0_31, %c0_32], %88 {strides = array<i32>} : memref<2x8x8xf32, #tpu.memory_space<vmem>>, vector<1x8x8xf32>,
    %cst_33 = arith.constant 0.000000e+00 : f32
    %89 = vector.broadcast %cst_33 : f32 to vector<8x8xf32>
    %90 = vector.extract_strided_slice %13 {offsets = [8, 0], sizes = [8, 8], strides = [1, 1]} : vector<16x96xf32> to vector<8x8xf32>
    %91 = vector.extract_strided_slice %13 {offsets = [8, 32], sizes = [8, 8], strides = [1, 1]} : vector<16x96xf32> to vector<8x8xf32>
    %92 = vector.extract_strided_slice %13 {offsets = [8, 64], sizes = [8, 8], strides = [1, 1]} : vector<16x96xf32> to vector<8x8xf32>
    %cst_34 = arith.constant dense<0.000000e+00> : vector<8x8xf32>
    %93 = tpu.matmul %90, %91, %cst_34 {dimension_numbers = #tpu.dot_dimension_numbers<[1], [1], [0], [0], [0, 0, 1, 0], [], []>} : vector<8x8xf32>, vector<8x8xf32>, vector<8x8xf32> -> vector<8x8xf32>
    %cst_35 = arith.constant 0.353553385 : f32
    %94 = vector.broadcast %cst_35 : f32 to vector<8x8xf32>
    %95 = arith.mulf %93, %94 : vector<8x8xf32>
    %cst_36 = arith.constant dense<0xFF800000> : vector<8xf32>
    %96 = vector.multi_reduction <maximumf>, %95, %cst_36 [1] : vector<8x8xf32> to vector<8xf32>
    %97 = vector.shape_cast %96 : vector<8xf32> to vector<8x1xf32>
    %98 = vector.broadcast %97 : vector<8x1xf32> to vector<8x8xf32>
    %99 = arith.subf %95, %98 : vector<8x8xf32>
    %100 = math.exp %99 : vector<8x8xf32>
    %cst_37 = arith.constant dense<0.000000e+00> : vector<8xf32>
    %101 = vector.multi_reduction <add>, %100, %cst_37 [1] : vector<8x8xf32> to vector<8xf32>
    %102 = vector.shape_cast %101 : vector<8xf32> to vector<8x1xf32>
    %103 = vector.broadcast %102 : vector<8x1xf32> to vector<8x8xf32>
    %104 = arith.divf %100, %103 : vector<8x8xf32>
    %cst_38 = arith.constant dense<0.000000e+00> : vector<8x8xf32>
    %105 = tpu.matmul %104, %92, %cst_38 {dimension_numbers = #tpu.dot_dimension_numbers<[1], [0], [0], [1], [0, 0, 1, 1], [], []>} : vector<8x8xf32>, vector<8x8xf32>, vector<8x8xf32> -> vector<8x8xf32>
    %106 = arith.addf %89, %104 : vector<8x8xf32>
    %107 = vector.extract_strided_slice %13 {offsets = [8, 8], sizes = [8, 8], strides = [1, 1]} : vector<16x96xf32> to vector<8x8xf32>
    %108 = vector.extract_strided_slice %13 {offsets = [8, 40], sizes = [8, 8], strides = [1, 1]} : vector<16x96xf32> to vector<8x8xf32>
    %109 = vector.extract_strided_slice %13 {offsets = [8, 72], sizes = [8, 8], strides = [1, 1]} : vector<16x96xf32> to vector<8x8xf32>
    %cst_39 = arith.constant dense<0.000000e+00> : vector<8x8xf32>
    %110 = tpu.matmul %107, %108, %cst_39 {dimension_numbers = #tpu.dot_dimension_numbers<[1], [1], [0], [0], [0, 0, 1, 0], [], []>} : vector<8x8xf32>, vector<8x8xf32>, vector<8x8xf32> -> vector<8x8xf32>
    %cst_40 = arith.constant 0.353553385 : f32
    %111 = vector.broadcast %cst_40 : f32 to vector<8x8xf32>
    %112 = arith.mulf %110, %111 : vector<8x8xf32>
    %cst_41 = arith.constant dense<0xFF800000> : vector<8xf32>
    %113 = vector.multi_reduction <maximumf>, %112, %cst_41 [1] : vector<8x8xf32> to vector<8xf32>
    %114 = vector.shape_cast %113 : vector<8xf32> to vector<8x1xf32>
    %115 = vector.broadcast %114 : vector<8x1xf32> to vector<8x8xf32>
    %116 = arith.subf %112, %115 : vector<8x8xf32>
    %117 = math.exp %116 : vector<8x8xf32>
    %cst_42 = arith.constant dense<0.000000e+00> : vector<8xf32>
    %118 = vector.multi_reduction <add>, %117, %cst_42 [1] : vector<8x8xf32> to vector<8xf32>
    %119 = vector.shape_cast %118 : vector<8xf32> to vector<8x1xf32>
    %120 = vector.broadcast %119 : vector<8x1xf32> to vector<8x8xf32>
    %121 = arith.divf %117, %120 : vector<8x8xf32>
    %cst_43 = arith.constant dense<0.000000e+00> : vector<8x8xf32>
    %122 = tpu.matmul %121, %109, %cst_43 {dimension_numbers = #tpu.dot_dimension_numbers<[1], [0], [0], [1], [0, 0, 1, 1], [], []>} : vector<8x8xf32>, vector<8x8xf32>, vector<8x8xf32> -> vector<8x8xf32>
    %123 = arith.addf %106, %121 : vector<8x8xf32>
    %124 = vector.extract_strided_slice %13 {offsets = [8, 16], sizes = [8, 8], strides = [1, 1]} : vector<16x96xf32> to vector<8x8xf32>
    %125 = vector.extract_strided_slice %13 {offsets = [8, 48], sizes = [8, 8], strides = [1, 1]} : vector<16x96xf32> to vector<8x8xf32>
    %126 = vector.extract_strided_slice %13 {offsets = [8, 80], sizes = [8, 8], strides = [1, 1]} : vector<16x96xf32> to vector<8x8xf32>
    %cst_44 = arith.constant dense<0.000000e+00> : vector<8x8xf32>
    %127 = tpu.matmul %124, %125, %cst_44 {dimension_numbers = #tpu.dot_dimension_numbers<[1], [1], [0], [0], [0, 0, 1, 0], [], []>} : vector<8x8xf32>, vector<8x8xf32>, vector<8x8xf32> -> vector<8x8xf32>
    %cst_45 = arith.constant 0.353553385 : f32
    %128 = vector.broadcast %cst_45 : f32 to vector<8x8xf32>
    %129 = arith.mulf %127, %128 : vector<8x8xf32>
    %cst_46 = arith.constant dense<0xFF800000> : vector<8xf32>
    %130 = vector.multi_reduction <maximumf>, %129, %cst_46 [1] : vector<8x8xf32> to vector<8xf32>
    %131 = vector.shape_cast %130 : vector<8xf32> to vector<8x1xf32>
    %132 = vector.broadcast %131 : vector<8x1xf32> to vector<8x8xf32>
    %133 = arith.subf %129, %132 : vector<8x8xf32>
    %134 = math.exp %133 : vector<8x8xf32>
    %cst_47 = arith.constant dense<0.000000e+00> : vector<8xf32>
    %135 = vector.multi_reduction <add>, %134, %cst_47 [1] : vector<8x8xf32> to vector<8xf32>
    %136 = vector.shape_cast %135 : vector<8xf32> to vector<8x1xf32>
    %137 = vector.broadcast %136 : vector<8x1xf32> to vector<8x8xf32>
    %138 = arith.divf %134, %137 : vector<8x8xf32>
    %cst_48 = arith.constant dense<0.000000e+00> : vector<8x8xf32>
    %139 = tpu.matmul %138, %126, %cst_48 {dimension_numbers = #tpu.dot_dimension_numbers<[1], [0], [0], [1], [0, 0, 1, 1], [], []>} : vector<8x8xf32>, vector<8x8xf32>, vector<8x8xf32> -> vector<8x8xf32>
    %140 = arith.addf %123, %138 : vector<8x8xf32>
    %141 = vector.extract_strided_slice %13 {offsets = [8, 24], sizes = [8, 8], strides = [1, 1]} : vector<16x96xf32> to vector<8x8xf32>
    %142 = vector.extract_strided_slice %13 {offsets = [8, 56], sizes = [8, 8], strides = [1, 1]} : vector<16x96xf32> to vector<8x8xf32>
    %143 = vector.extract_strided_slice %13 {offsets = [8, 88], sizes = [8, 8], strides = [1, 1]} : vector<16x96xf32> to vector<8x8xf32>
    %cst_49 = arith.constant dense<0.000000e+00> : vector<8x8xf32>
    %144 = tpu.matmul %141, %142, %cst_49 {dimension_numbers = #tpu.dot_dimension_numbers<[1], [1], [0], [0], [0, 0, 1, 0], [], []>} : vector<8x8xf32>, vector<8x8xf32>, vector<8x8xf32> -> vector<8x8xf32>
    %cst_50 = arith.constant 0.353553385 : f32
    %145 = vector.broadcast %cst_50 : f32 to vector<8x8xf32>
    %146 = arith.mulf %144, %145 : vector<8x8xf32>
    %cst_51 = arith.constant dense<0xFF800000> : vector<8xf32>
    %147 = vector.multi_reduction <maximumf>, %146, %cst_51 [1] : vector<8x8xf32> to vector<8xf32>
    %148 = vector.shape_cast %147 : vector<8xf32> to vector<8x1xf32>
    %149 = vector.broadcast %148 : vector<8x1xf32> to vector<8x8xf32>
    %150 = arith.subf %146, %149 : vector<8x8xf32>
    %151 = math.exp %150 : vector<8x8xf32>
    %cst_52 = arith.constant dense<0.000000e+00> : vector<8xf32>
    %152 = vector.multi_reduction <add>, %151, %cst_52 [1] : vector<8x8xf32> to vector<8xf32>
    %153 = vector.shape_cast %152 : vector<8xf32> to vector<8x1xf32>
    %154 = vector.broadcast %153 : vector<8x1xf32> to vector<8x8xf32>
    %155 = arith.divf %151, %154 : vector<8x8xf32>
    %cst_53 = arith.constant dense<0.000000e+00> : vector<8x8xf32>
    %156 = tpu.matmul %155, %143, %cst_53 {dimension_numbers = #tpu.dot_dimension_numbers<[1], [0], [0], [1], [0, 0, 1, 1], [], []>} : vector<8x8xf32>, vector<8x8xf32>, vector<8x8xf32> -> vector<8x8xf32>
    %157 = arith.addf %140, %155 : vector<8x8xf32>
    %158 = tpu.concatenate %105, %122, %139, %156 in 1 : vector<8x8xf32>, vector<8x8xf32>, vector<8x8xf32>, vector<8x8xf32> -> vector<8x32xf32>
    %cst_54 = arith.constant 2.500000e-01 : f32
    %159 = vector.broadcast %cst_54 : f32 to vector<8x8xf32>
    %160 = arith.mulf %157, %159 : vector<8x8xf32>
    %c1 = arith.constant 1 : index
    %c0_55 = arith.constant 0 : index
    %c0_56 = arith.constant 0 : index
    %161 = vector.load %arg10[%c1, %c0_55, %c0_56] : memref<2x8x8xf32, #tpu.memory_space<vmem>>, vector<1x8x8xf32>
    %162 = vector.shape_cast %161 : vector<1x8x8xf32> to vector<8x8xf32>
    %163 = vector.shape_cast %160 : vector<8x8xf32> to vector<1x8x8xf32>
    tpu.vector_store %arg10[%c1, %c0_55, %c0_56], %163 {strides = array<i32>} : memref<2x8x8xf32, #tpu.memory_space<vmem>>, vector<1x8x8xf32>,
    %164 = tpu.concatenate %83, %158 in 0 : vector<8x32xf32>, vector<8x32xf32> -> vector<16x32xf32>
    %c0_57 = arith.constant 0 : index
    %c0_58 = arith.constant 0 : index
    %165 = vector.load %arg3[%c0_57, %c0_58] : memref<32x32xf32, #tpu.memory_space<vmem>>, vector<32x32xf32>
    %cst_59 = arith.constant dense<0.000000e+00> : vector<16x32xf32>
    %166 = tpu.matmul %164, %165, %cst_59 {dimension_numbers = #tpu.dot_dimension_numbers<[1], [0], [0], [1], [0, 0, 1, 1], [], []>} : vector<16x32xf32>, vector<32x32xf32>, vector<16x32xf32> -> vector<16x32xf32>
    %167 = vector.broadcast %1 : vector<1x32xf32> to vector<16x32xf32>
    %168 = arith.addf %166, %167 : vector<16x32xf32>
    %169 = arith.addf %8, %168 : vector<16x32xf32>
    %cst_60 = arith.constant dense<0.000000e+00> : vector<16xf32>
    %170 = vector.multi_reduction <add>, %169, %cst_60 [1] : vector<16x32xf32> to vector<16xf32>
    %171 = vector.shape_cast %170 : vector<16xf32> to vector<16x1xf32>
    %cst_61 = arith.constant 3.200000e+01 : f32
    %172 = vector.broadcast %cst_61 : f32 to vector<16x1xf32>
    %173 = arith.divf %171, %172 : vector<16x1xf32>
    %174 = vector.broadcast %173 : vector<16x1xf32> to vector<16x32xf32>
    %175 = arith.subf %169, %174 : vector<16x32xf32>
    %176 = arith.mulf %175, %175 : vector<16x32xf32>
    %cst_62 = arith.constant dense<0.000000e+00> : vector<16xf32>
    %177 = vector.multi_reduction <add>, %176, %cst_62 [1] : vector<16x32xf32> to vector<16xf32>
    %178 = vector.shape_cast %177 : vector<16xf32> to vector<16x1xf32>
    %cst_63 = arith.constant 3.200000e+01 : f32
    %179 = vector.broadcast %cst_63 : f32 to vector<16x1xf32>
    %180 = arith.divf %178, %179 : vector<16x1xf32>
    %181 = vector.broadcast %173 : vector<16x1xf32> to vector<16x32xf32>
    %182 = arith.subf %169, %181 : vector<16x32xf32>
    %cst_64 = arith.constant 9.99999974E-6 : f32
    %183 = vector.broadcast %cst_64 : f32 to vector<16x1xf32>
    %184 = arith.addf %180, %183 : vector<16x1xf32>
    %185 = math.rsqrt %184 : vector<16x1xf32>
    %186 = vector.broadcast %185 : vector<16x1xf32> to vector<16x32xf32>
    %187 = arith.mulf %182, %186 : vector<16x32xf32>
    %188 = vector.broadcast %3 : vector<1x32xf32> to vector<16x32xf32>
    %189 = arith.mulf %187, %188 : vector<16x32xf32>
    %190 = vector.broadcast %4 : vector<1x32xf32> to vector<16x32xf32>
    %191 = arith.addf %189, %190 : vector<16x32xf32>
    %192 = arith.addf %8, %191 : vector<16x32xf32>
    %c0_65 = arith.constant 0 : index
    %c0_66 = arith.constant 0 : index
    %193 = vector.load %arg4[%c0_65, %c0_66] : memref<32x128xf32, #tpu.memory_space<vmem>>, vector<32x128xf32>
    %cst_67 = arith.constant dense<0.000000e+00> : vector<16x128xf32>
    %194 = tpu.matmul %192, %193, %cst_67 {dimension_numbers = #tpu.dot_dimension_numbers<[1], [0], [0], [1], [0, 0, 1, 1], [], []>} : vector<16x32xf32>, vector<32x128xf32>, vector<16x128xf32> -> vector<16x128xf32>
    %c0_68 = arith.constant 0 : index
    %c0_69 = arith.constant 0 : index
    %195 = vector.load %arg7[%c0_68, %c0_69] : memref<1x128xf32, #tpu.memory_space<vmem>>, vector<1x128xf32>
    %196 = vector.broadcast %195 : vector<1x128xf32> to vector<16x128xf32>
    %197 = arith.addf %194, %196 : vector<16x128xf32>
    %cst_70 = arith.constant 0.000000e+00 : f32
    %198 = vector.broadcast %cst_70 : f32 to vector<16x128xf32>
    %199 = arith.maximumf %197, %198 : vector<16x128xf32>
    %c0_71 = arith.constant 0 : index
    %c0_72 = arith.constant 0 : index
    %200 = vector.load %arg5[%c0_71, %c0_72] : memref<128x32xf32, #tpu.memory_space<vmem>>, vector<128x32xf32>
    %cst_73 = arith.constant dense<0.000000e+00> : vector<16x32xf32>
    %201 = tpu.matmul %199, %200, %cst_73 {dimension_numbers = #tpu.dot_dimension_numbers<[1], [0], [0], [1], [0, 0, 1, 1], [], []>} : vector<16x128xf32>, vector<128x32xf32>, vector<16x32xf32> -> vector<16x32xf32>
    %202 = vector.broadcast %2 : vector<1x32xf32> to vector<16x32xf32>
    %203 = arith.addf %201, %202 : vector<16x32xf32>
    %204 = arith.addf %192, %203 : vector<16x32xf32>
    %205 = math.tanh %204 : vector<16x32xf32>
    %206 = arith.addf %191, %205 : vector<16x32xf32>
    %cst_74 = arith.constant dense<0.000000e+00> : vector<16xf32>
    %207 = vector.multi_reduction <add>, %206, %cst_74 [1] : vector<16x32xf32> to vector<16xf32>
    %208 = vector.shape_cast %207 : vector<16xf32> to vector<16x1xf32>
    %cst_75 = arith.constant 3.200000e+01 : f32
    %209 = vector.broadcast %cst_75 : f32 to vector<16x1xf32>
    %210 = arith.divf %208, %209 : vector<16x1xf32>
    %211 = vector.broadcast %210 : vector<16x1xf32> to vector<16x32xf32>
    %212 = arith.subf %206, %211 : vector<16x32xf32>
    %213 = arith.mulf %212, %212 : vector<16x32xf32>
    %cst_76 = arith.constant dense<0.000000e+00> : vector<16xf32>
    %214 = vector.multi_reduction <add>, %213, %cst_76 [1] : vector<16x32xf32> to vector<16xf32>
    %215 = vector.shape_cast %214 : vector<16xf32> to vector<16x1xf32>
    %cst_77 = arith.constant 3.200000e+01 : f32
    %216 = vector.broadcast %cst_77 : f32 to vector<16x1xf32>
    %217 = arith.divf %215, %216 : vector<16x1xf32>
    %218 = vector.broadcast %210 : vector<16x1xf32> to vector<16x32xf32>
    %219 = arith.subf %206, %218 : vector<16x32xf32>
    %cst_78 = arith.constant 9.99999974E-6 : f32
    %220 = vector.broadcast %cst_78 : f32 to vector<16x1xf32>
    %221 = arith.addf %217, %220 : vector<16x1xf32>
    %222 = math.rsqrt %221 : vector<16x1xf32>
    %223 = vector.broadcast %222 : vector<16x1xf32> to vector<16x32xf32>
    %224 = arith.mulf %219, %223 : vector<16x32xf32>
    %225 = vector.broadcast %5 : vector<1x32xf32> to vector<16x32xf32>
    %226 = arith.mulf %224, %225 : vector<16x32xf32>
    %227 = vector.broadcast %6 : vector<1x32xf32> to vector<16x32xf32>
    %228 = arith.addf %226, %227 : vector<16x32xf32>
    %229 = vector.shape_cast %228 : vector<16x32xf32> to vector<2x8x32xf32>
    %c0_79 = arith.constant 0 : index
    %c0_80 = arith.constant 0 : index
    %c0_81 = arith.constant 0 : index
    %230 = vector.load %arg9[%c0_79, %c0_80, %c0_81] : memref<2x8x32xf32, #tpu.memory_space<vmem>>, vector<2x8x32xf32>
    tpu.vector_store %arg9[%c0_79, %c0_80, %c0_81], %229 {strides = array<i32>} : memref<2x8x32xf32, #tpu.memory_space<vmem>>, vector<2x8x32xf32>,
    return
  }
  func.func @transform_0(%arg0: i32) -> (i32, i32, i32) {
    %c0_i32 = arith.constant 0 : i32
    %c0_i32_0 = arith.constant 0 : i32
    %c0_i32_1 = arith.constant 0 : i32
    return %arg0, %c0_i32, %c0_i32_0 : i32, i32, i32
  }
  func.func @transform_1(%arg0: i32) -> (i32, i32) {
    %c0_i32 = arith.constant 0 : i32
    %c0_i32_0 = arith.constant 0 : i32
    %c0_i32_1 = arith.constant 0 : i32
    return %c0_i32, %c0_i32_0 : i32, i32
  }
  func.func @transform_2(%arg0: i32) -> (i32, i32) {
    %c0_i32 = arith.constant 0 : i32
    %c0_i32_0 = arith.constant 0 : i32
    %c0_i32_1 = arith.constant 0 : i32
    return %c0_i32, %c0_i32_0 : i32, i32
  }
  func.func @transform_3(%arg0: i32) -> (i32, i32) {
    %c0_i32 = arith.constant 0 : i32
    %c0_i32_0 = arith.constant 0 : i32
    %c0_i32_1 = arith.constant 0 : i32
    return %c0_i32, %c0_i32_0 : i32, i32
  }
  func.func @transform_4(%arg0: i32) -> (i32, i32) {
    %c0_i32 = arith.constant 0 : i32
    %c0_i32_0 = arith.constant 0 : i32
    %c0_i32_1 = arith.constant 0 : i32
    return %c0_i32, %c0_i32_0 : i32, i32
  }
  func.func @transform_5(%arg0: i32) -> (i32, i32) {
    %c0_i32 = arith.constant 0 : i32
    %c0_i32_0 = arith.constant 0 : i32
    %c0_i32_1 = arith.constant 0 : i32
    return %c0_i32, %c0_i32_0 : i32, i32
  }
  func.func @transform_6(%arg0: i32) -> (i32, i32) {
    %c0_i32 = arith.constant 0 : i32
    %c0_i32_0 = arith.constant 0 : i32
    %c0_i32_1 = arith.constant 0 : i32
    return %c0_i32, %c0_i32_0 : i32, i32
  }
  func.func @transform_7(%arg0: i32) -> (i32, i32) {
    %c0_i32 = arith.constant 0 : i32
    %c0_i32_0 = arith.constant 0 : i32
    %c0_i32_1 = arith.constant 0 : i32
    return %c0_i32, %c0_i32_0 : i32, i32
  }
  func.func @transform_8(%arg0: i32) -> (i32, i32, i32) {
    %c0_i32 = arith.constant 0 : i32
    %c0_i32_0 = arith.constant 0 : i32
    %c0_i32_1 = arith.constant 0 : i32
    return %arg0, %c0_i32, %c0_i32_0 : i32, i32, i32
  }
  func.func @transform_9(%arg0: i32) -> (i32, i32, i32) {
    %c0_i32 = arith.constant 0 : i32
    %c0_i32_0 = arith.constant 0 : i32
    %c0_i32_1 = arith.constant 0 : i32
    return %arg0, %c0_i32, %c0_i32_0 : i32, i32, i32
  }
}

</mosaic_0001>

<bundles_post_ra>
// kernel: tpu_custom_call.1
= control target key start
LH: loop header
LB: loop body
LE: loop exit
PB: predicated region body
PF: predicated region fallthrough
CT: control target
= control target key end

     0   :  { %15 = vsyncpa [#allocation3], 0  ;;  %vm47_vm0 = vcmask 261120   ;;  %s2718_s0 = inlined_call_operand.vmem [shape: f32[2,8,32], index: 0, kind: input, shape index: {}]   ;;  %s2719_s1 = inlined_call_operand.vmem [shape: f32[32,96], index: 1, kind: input, shape index: {}]   ;;  %s2720_s2 = inlined_call_operand.vmem [shape: f32[32,32], index: 2, kind: input, shape index: {}]   ;;  %s2721_s3 = inlined_call_operand.vmem [shape: f32[32,128], index: 3, kind: input, shape index: {}]   ;;  %s2722_s4 = inlined_call_operand.vmem [shape: f32[128,32], index: 4, kind: input, shape index: {}]   ;;  %s2723_s5 = inlined_call_operand.vmem [shape: f32[1,96], index: 5, kind: input, shape index: {}]   ;;  %s2724_s6 = inlined_call_operand.vmem [shape: f32[1,128], index: 6, kind: input, shape index: {}]   ;;  %s2725_s7 = inlined_call_operand.vmem [shape: f32[6,32], index: 7, kind: input, shape index: {}]   ;;  %s2726_s8 = inlined_call_operand.hbm [shape: f32[2,8,32], index: 8, kind: output, shape index: {0}]   ;;  %s2727_s9 = inlined_call_operand.hbm [shape: f32[2,8,8], index: 9, kind: output, shape index: {1}]  }
   0x1   :  { %v36_v0 = vld [vmem:[%s2719_s1] sm:$0xff]  ;;  %v37_v1 = vld [vmem:[%s2719_s1 + $0x8] sm:$0xff]  ;;  %v38_v2 = vld [vmem:[%s2719_s1 + $0x10] sm:$0xff] }
   0x2   :  { %v2148_v3 = vpack.c.bf16 %v37_v1, %v36_v0  ;;  %v39_v4 = vld [vmem:[%s2719_s1 + $0x18] sm:$0xff]  ;;  %v2399_v5 = vld [vmem:[%s2718_s0] sm:$0xff] }
   0x3   :  { %v2152_v6 = vpack.c.bf16 %v39_v4, %v38_v2  ;;  %2008 = vmatprep.mubr.msk.f32.mxu1 %vm47_vm0, %v2399_v5 }
   0x4   :  { %16 = vsyncpa [#allocation5], 0  ;;  %2149 = vmatprep.subr.bf16.mxu1 %v2148_v3  ;;  %v2406_v7 = vld [vmem:[%s2718_s0 + $0x8] sm:$0xff]  ;;  %v2315_v8 = vmov 0.0   ;;  %vm2316_vm1 = vmmov 0   ;;  %s2317_s0 = smov 120  }
   0x5   :  { %2151 = vmatpush3.bf16.msra.mxu1 %v2148_v3  ;;  %2021 = vmatprep.subr.mxu0 %v2315_v8  ;;  %v1900_v9 = vld [vmem:[%s2723_s5] ss:$0 sm:$0xff]  ;;  %s2318_s22 = smov 96   ;;  %s2319_s23 = smov 80   ;;  %vm132_vm2 = vcmask 64512   ;;  %vm810_vm3 = vcmask 130048  }
   0x6   :  { %2153 = vmatprep.subr.bf16.mxu1 %v2152_v6  ;;  %2023 = vmatprep.mubr.msk.f32.mxu0 %vm2316_vm1, %v2315_v8  ;;  %s2320_s24 = smov 88   ;;  %s2321_s25 = smov 72   ;;  %vm812_vm4 = vcmask 195584  }
   0x7   :  { %s2322_s5 = smov 112   ;;  %s2323_s26 = smov 104  }
   0x8   :  { %s2324_s27 = smov 56   ;;  %s2325_s28 = smov 64  }
   0x9   :  { %2155 = vmatpush3.bf16.msra.mxu1 %v2152_v6  ;;  %s2326_s29 = smov 40   ;;  %s2327_s30 = smov 48  }
   0xa   :  { %2011 = vmatprep.subr.mxu1 %v2315_v8  ;;  %s2328_s10 = smov 8   ;;  %s2329_s11 = smov 16  }
   0xb   :  { %s2330_s12 = smov 24  }
   0xc   :  { %2009 = vmatmul.mubr.msk.f32.vlgmr.msra.gmra.mrb[0].mxu1 %vm47_vm0, %v2406_v7 }
   0xd   :  { %2013 = vmatprep.mubr.msk.f32.mxu1 %vm2316_vm1, %v2315_v8 }
  0xdf   :  { %v2010_v10 = vpop.f32.mrb[0].mxu1 }
  0xe0   :  { %v120_v11 = vpop.f32.mrb[1].mxu1  ;;  %v2427_v13 = vadd.f32 %v2010_v10, %v1900_v9 }
  0xe1   :  { %v2419_v12 = vadd.f32 %v1900_v9, %v120_v11 }
  0xe3   :  { %296 = vrot.lane.b32.xlu1 %v2419_v12, %s2317_s0  ;;  %130 = vrot.lane.b32.xlu0 %v2419_v12, %s2318_s22 }
  0xe7   :  { %465 = vrot.lane.b32.xlu1 %v2419_v12, %s2319_s23  ;;  %298 = vrot.lane.b32.xlu0 %v2419_v12, %s2320_s24 }
  0xeb   :  { %632 = vrot.lane.b32.xlu1 %v2419_v12, %s2321_s25  ;;  %463 = vrot.lane.b32.xlu0 %v2419_v12, %s2322_s5 }
  0xef   :  { %817 = vrot.lane.b32.xlu1 %v2427_v13, %s2318_s22  ;;  %630 = vrot.lane.b32.xlu0 %v2419_v12, %s2323_s26 }
  0xf3   :  { %982 = vrot.lane.b32.xlu1 %v2427_v13, %s2317_s0  ;;  %984 = vrot.lane.b32.xlu0 %v2427_v13, %s2320_s24 }
  0xf7   :  { %1149 = vrot.lane.b32.xlu1 %v2427_v13, %s2322_s5  ;;  %1151 = vrot.lane.b32.xlu0 %v2427_v13, %s2319_s23 }
  0xfb   :  { %1316 = vrot.lane.b32.xlu1 %v2427_v13, %s2323_s26  ;;  %1318 = vrot.lane.b32.xlu0 %v2427_v13, %s2321_s25 }
  0xff   :  { %386 = vrot.lane.b32.xlu1 %v2419_v12, %s2324_s27  ;;  %219 = vrot.lane.b32.xlu0 %v2419_v12, %s2325_s28 }
 0x155   :  { %v297_v14 = vpop.permute.xlu1 %296  ;;  %v131_v15 = vpop.permute.xlu0 %130 }
 0x156   :  { %2012 = vmatpush3.xpose.msk.msra.mxu1 %vm132_vm2, %v131_v15 }
 0x157   :  { %2016 = vmatprep.subr.mxu1 %v2315_v8 }
 0x159   :  { %v466_v16 = vpop.permute.xlu1 %465  ;;  %2014 = vmatmul.mubr.msk.f32.vlgmr.msra.gmra.mrb[2].mxu1 %vm132_vm2, %v2419_v12  ;;  %v299_v17 = vpop.permute.xlu0 %298 }
 0x15a   :  { %2022 = vmatpush3.xpose.msk.msra.mxu0 %vm132_vm2, %v299_v17  ;;  %2018 = vmatprep.mubr.msk.f32.mxu1 %vm2316_vm1, %v2315_v8 }
 0x15b   :  { %2031 = vmatprep.subr.mxu0 %v2315_v8 }
 0x15d   :  { %v633_v18 = vpop.permute.xlu1 %632  ;;  %2024 = vmatmul.mubr.msk.f32.vlgmr.msra.gmra.mrb[0].mxu0 %vm132_vm2, %v297_v14  ;;  %v464_v19 = vpop.permute.xlu0 %463 }
 0x15e   :  { %2032 = vmatpush3.xpose.msk.msra.mxu0 %vm132_vm2, %v466_v16  ;;  %2033 = vmatprep.mubr.msk.f32.mxu0 %vm2316_vm1, %v2315_v8 }
 0x15f   :  { %2041 = vmatprep.subr.mxu0 %v2315_v8 }
 0x161   :  { %2034 = vmatmul.mubr.msk.f32.vlgmr.msra.gmra.mrb[2].mxu0 %vm132_vm2, %v464_v19  ;;  %v631_v20 = vpop.permute.xlu0 %630  ;;  %v818_v21 = vpop.permute.xlu1 %817 }
 0x162   :  { %2042 = vmatpush3.xpose.msk.msra.mxu0 %vm132_vm2, %v633_v18  ;;  %2043 = vmatprep.mubr.msk.f32.mxu0 %vm2316_vm1, %v2315_v8 }
 0x163   :  { %2051 = vmatprep.subr.mxu0 %v2315_v8 }
 0x165   :  { %2044 = vmatmul.mubr.msk.f32.vlgmr.msra.gmra.mrb[4].mxu0 %vm132_vm2, %v631_v20  ;;  %v985_v22 = vpop.permute.xlu0 %984  ;;  %v983_v23 = vpop.permute.xlu1 %982 }
 0x166   :  { %2052 = vmatpush3.xpose.msk.msra.mxu0 %vm132_vm2, %v818_v21  ;;  %2053 = vmatprep.mubr.msk.f32.mxu0 %vm2316_vm1, %v2315_v8 }
 0x167   :  { %2061 = vmatprep.subr.mxu0 %v2315_v8 }
 0x169   :  { %2054 = vmatmul.mubr.msk.f32.vlgmr.msra.gmra.mrb[6].mxu0 %vm132_vm2, %v2427_v13  ;;  %v1152_v24 = vpop.permute.xlu0 %1151  ;;  %v1150_v26 = vpop.permute.xlu1 %1149 }
 0x16a   :  { %2062 = vmatpush3.xpose.msk.msra.mxu0 %vm132_vm2, %v985_v22  ;;  %2063 = vmatprep.mubr.msk.f32.mxu0 %vm2316_vm1, %v2315_v8 }
 0x16b   :  { %2071 = vmatprep.subr.mxu0 %v2315_v8 }
 0x16d   :  { %2064 = vmatmul.mubr.msk.f32.vlgmr.msra.gmra.mrb[8].mxu0 %vm132_vm2, %v983_v23  ;;  %v1319_v25 = vpop.permute.xlu0 %1318  ;;  %v1317_v28 = vpop.permute.xlu1 %1316 }
 0x16e   :  { %2072 = vmatpush3.xpose.msk.msra.mxu0 %vm132_vm2, %v1152_v24  ;;  %2073 = vmatprep.mubr.msk.f32.mxu0 %vm2316_vm1, %v2315_v8 }
 0x16f   :  { %2081 = vmatprep.subr.mxu0 %v2315_v8 }
 0x171   :  { %2074 = vmatmul.mubr.msk.f32.vlgmr.msra.gmra.mrb[10].mxu0 %vm132_vm2, %v1150_v26  ;;  %v220_v27 = vpop.permute.xlu0 %219  ;;  %v2493_v61 = vpop.permute.xlu1 %386 }
 0x172   :  { %2017 = vmatpush3.msra.mxu1 %v220_v27  ;;  %2082 = vmatpush3.xpose.msk.msra.mxu0 %vm132_vm2, %v1319_v25 }
 0x173   :  { %2083 = vmatprep.mubr.msk.f32.mxu0 %vm2316_vm1, %v2315_v8  ;;  %2026 = vmatprep.subr.mxu1 %v2315_v8 }
 0x175   :  { %2084 = vmatmul.mubr.msk.f32.vlgmr.msra.gmra.mrb[12].mxu0 %vm132_vm2, %v1317_v28 }
 0x22c   :  { %v203_v29 = vpop.f32.mrb[2].mxu1 }
 0x22d   :  { %v207_v30 = vmul.f32 0.35355338, %v203_v29  ;;  %v2015_v31 = vpop.f32.mrb[3].mxu1 }
 0x22f   :  { %v208_v32 = vsel %vm132_vm2, %v207_v30, -inf }
 0x230   :  { %209 = vmax.xlane.f32.xlu0 %v208_v32  ;;  %v370_v33 = vpop.f32.mrb[0].mxu0 }
 0x231   :  { %v374_v34 = vmul.f32 0.35355338, %v370_v33  ;;  %v2025_v35 = vpop.f32.mrb[1].mxu0 }
 0x233   :  { %v375_v36 = vsel %vm132_vm2, %v374_v34, -inf }
 0x234   :  { %376 = vmax.xlane.f32.xlu1 %v375_v36  ;;  %v537_v37 = vpop.f32.mrb[2].mxu0 }
 0x235   :  { %v541_v38 = vmul.f32 0.35355338, %v537_v37  ;;  %v2035_v39 = vpop.f32.mrb[3].mxu0 }
 0x237   :  { %v542_v40 = vsel %vm132_vm2, %v541_v38, -inf }
 0x238   :  { %543 = vmax.xlane.f32.xlu0 %v542_v40  ;;  %v704_v41 = vpop.f32.mrb[4].mxu0 }
 0x239   :  { %v708_v42 = vmul.f32 0.35355338, %v704_v41  ;;  %v2045_v43 = vpop.f32.mrb[5].mxu0 }
 0x23b   :  { %v709_v44 = vsel %vm132_vm2, %v708_v42, -inf }
 0x23c   :  { %710 = vmax.xlane.f32.xlu0 %v709_v44  ;;  %v889_v45 = vpop.f32.mrb[6].mxu0 }
 0x23d   :  { %v893_v46 = vmul.f32 0.35355338, %v889_v45  ;;  %v2055_v47 = vpop.f32.mrb[7].mxu0 }
 0x23f   :  { %v894_v48 = vsel %vm132_vm2, %v893_v46, -inf }
 0x240   :  { %895 = vmax.xlane.f32.xlu1 %v894_v48  ;;  %v1056_v49 = vpop.f32.mrb[8].mxu0 }
 0x241   :  { %v1060_v50 = vmul.f32 0.35355338, %v1056_v49  ;;  %v2065_v51 = vpop.f32.mrb[9].mxu0 }
 0x243   :  { %v1061_v52 = vsel %vm132_vm2, %v1060_v50, -inf }
 0x244   :  { %1062 = vmax.xlane.f32.xlu0 %v1061_v52  ;;  %v1223_v53 = vpop.f32.mrb[10].mxu0 }
 0x245   :  { %v1227_v54 = vmul.f32 0.35355338, %v1223_v53  ;;  %v2075_v55 = vpop.f32.mrb[11].mxu0 }
 0x247   :  { %v1228_v56 = vsel %vm132_vm2, %v1227_v54, -inf }
 0x248   :  { %1229 = vmax.xlane.f32.xlu1 %v1228_v56  ;;  %v1390_v57 = vpop.f32.mrb[12].mxu0 }
 0x249   :  { %v1394_v58 = vmul.f32 0.35355338, %v1390_v57  ;;  %v2085_v59 = vpop.f32.mrb[13].mxu0 }
 0x24b   :  { %v1395_v60 = vsel %vm132_vm2, %v1394_v58, -inf }
 0x24c   :  { %1396 = vmax.xlane.f32.xlu0 %v1395_v60 }
 0x259   :  { %720 = vrot.lane.b32.xlu1 %v2419_v12, %s2326_s29 }
 0x262   :  { %553 = vrot.lane.b32.xlu0 %v2419_v12, %s2327_s30 }
 0x2bd   :  { %v210_v62 = vpop.xlane.xlu0 %209 }
 0x2be   :  { %v211_v63 = vsub.f32 %v207_v30, %v210_v62 }
 0x2c0   :  { %v212_v0 = vmul.f32 1.442695, %v211_v63 }
 0x2c1   :  { %v377_v1 = vpop.xlane.xlu1 %376 }
 0x2c2   :  { %2223 = vpow2.f32 %v212_v0  ;;  %v378_v2 = vsub.f32 %v374_v34, %v377_v1 }
 0x2c4   :  { %v379_v3 = vmul.f32 1.442695, %v378_v2 }
 0x2c5   :  { %v544_v4 = vpop.xlane.xlu0 %543 }
 0x2c6   :  { %2225 = vpow2.f32 %v379_v3  ;;  %v545_v6 = vsub.f32 %v541_v38, %v544_v4 }
 0x2c8   :  { %v546_v9 = vmul.f32 1.442695, %v545_v6 }
 0x2c9   :  { %v711_v10 = vpop.xlane.xlu0 %710 }
 0x2ca   :  { %2227 = vpow2.f32 %v546_v9  ;;  %v712_v11 = vsub.f32 %v708_v42, %v711_v10 }
 0x2cc   :  { %v2224_v14 = vpop.eup %2223  ;;  %v713_v15 = vmul.f32 1.442695, %v712_v11 }
 0x2cd   :  { %v214_v12 = vsel %vm132_vm2, %v2224_v14, 0.0  ;;  %v896_v22 = vpop.xlane.xlu1 %895 }
 0x2ce   :  { %2229 = vpow2.f32 %v713_v15  ;;  %215 = vadd.xlane.f32.xlu1 %v214_v12  ;;  %v897_v23 = vsub.f32 %v893_v46, %v896_v22 }
 0x2d0   :  { %v2226_v16 = vpop.eup %2225  ;;  %v898_v27 = vmul.f32 1.442695, %v897_v23 }
 0x2d1   :  { %v381_v17 = vsel %vm132_vm2, %v2226_v16, 0.0  ;;  %v1063_v24 = vpop.xlane.xlu0 %1062 }
 0x2d2   :  { %382 = vadd.xlane.f32.xlu0 %v381_v17  ;;  %v1064_v26 = vsub.f32 %v1060_v50, %v1063_v24  ;;  %2231 = vpow2.f32 %v898_v27  ;;  %v1502_v27 = vld [vmem:[%s2720_s2 + $0x8] sm:$0xff] }
 0x2d4   :  { %v2228_v18 = vpop.eup %2227  ;;  %v1065_v30 = vmul.f32 1.442695, %v1064_v26  ;;  %v1501_v26 = vld [vmem:[%s2720_s2] sm:$0xff] }
 0x2d5   :  { %v548_v19 = vsel %vm132_vm2, %v2228_v18, 0.0  ;;  %v1230_v25 = vpop.xlane.xlu1 %1229 }
 0x2d6   :  { %549 = vadd.xlane.f32.xlu1 %v548_v19  ;;  %v1231_v28 = vsub.f32 %v1227_v54, %v1230_v25  ;;  %2233 = vpow2.f32 %v1065_v30  ;;  %v1504_v30 = vld [vmem:[%s2720_s2 + $0x18] sm:$0xff] }
 0x2d8   :  { %v2498_v20 = vpop.eup %2229  ;;  %v1232_v31 = vmul.f32 1.442695, %v1231_v28  ;;  %v2156_v28 = vpack.c.bf16 %v1502_v27, %v1501_v26  ;;  %v1732_v26 = vld [vmem:[%s2722_s4 + $0x28] sm:$0xff] }
 0x2d9   :  { %v715_v21 = vsel %vm132_vm2, %v2498_v20, 0.0  ;;  %v1397_v29 = vpop.xlane.xlu0 %1396  ;;  %v721_v42 = vpop.permute.xlu1 %720 }
 0x2da   :  { %716 = vadd.xlane.f32.xlu0 %v715_v21  ;;  %v1398_v32 = vsub.f32 %v1394_v58, %v1397_v29  ;;  %2235 = vpow2.f32 %v1232_v31  ;;  %v1503_v29 = vld [vmem:[%s2720_s2 + $0x10] sm:$0xff] }
 0x2db   :  { %v2160_v31 = vpack.c.bf16 %v1504_v30, %v1503_v29  ;;  %v1734_v29 = vld [vmem:[%s2722_s4 + $0x38] sm:$0xff] }
 0x2dc   :  { %v1399_v33 = vmul.f32 1.442695, %v1398_v32  ;;  %v2506_v34 = vpop.eup %2231 }
 0x2dd   :  { %v900_v36 = vsel %vm132_vm2, %v2506_v34, 0.0  ;;  %v554_v43 = vpop.permute.xlu0 %553 }
 0x2de   :  { %2237 = vpow2.f32 %v1399_v33 }
 0x2e0   :  { %v2508_v35 = vpop.eup %2233 }
 0x2e1   :  { %v1067_v39 = vsel %vm132_vm2, %v2508_v35, 0.0 }
 0x2e4   :  { %v2512_v37 = vpop.eup %2235 }
 0x2e5   :  { %v1234_v38 = vsel %vm132_vm2, %v2512_v37, 0.0 }
 0x2e7   :  { %1072 = vrot.lane.b32.xlu1 %v2427_v13, %s2324_s27 }
 0x2e8   :  { %v2518_v40 = vpop.eup %2237 }
 0x2e9   :  { %v1401_v41 = vsel %vm132_vm2, %v2518_v40, 0.0 }
 0x2f0   :  { %905 = vrot.lane.b32.xlu0 %v2427_v13, %s2325_s28 }
 0x30b   :  { %901 = vadd.xlane.f32.xlu1 %v900_v36 }
 0x30f   :  { %1235 = vadd.xlane.f32.xlu1 %v1234_v38  ;;  %1068 = vadd.xlane.f32.xlu0 %v1067_v39 }
 0x313   :  { %1402 = vadd.xlane.f32.xlu1 %v1401_v41 }
 0x324   :  { %1406 = vrot.lane.b32.xlu1 %v2427_v13, %s2326_s29 }
 0x325   :  { %1239 = vrot.lane.b32.xlu0 %v2427_v13, %s2327_s30 }
 0x35b   :  { %v216_v44 = vpop.xlane.xlu1 %215 }
 0x35c   :  { %2239 = vrcp.f32 %v216_v44 }
 0x35f   :  { %v383_v45 = vpop.xlane.xlu0 %382 }
 0x360   :  { %2241 = vrcp.f32 %v383_v45 }
 0x363   :  { %v550_v46 = vpop.xlane.xlu1 %549 }
 0x364   :  { %2243 = vrcp.f32 %v550_v46 }
 0x366   :  { %v2240_v47 = vpop.eup %2239 }
 0x367   :  { %v218_v48 = vmul.f32 %v2240_v47, %v2224_v14  ;;  %v717_v49 = vpop.xlane.xlu0 %716  ;;  %v1073_v60 = vpop.permute.xlu1 %1072 }
 0x368   :  { %2245 = vrcp.f32 %v717_v49 }
 0x369   :  { %2019 = vmatmul.mubr.msk.f32.vlgmr.msra.gmra.mrb[4].mxu1 %vm132_vm2, %v218_v48 }
 0x36a   :  { %v2242_v50 = vpop.eup %2241  ;;  %2027 = vmatpush3.msra.mxu1 %v2493_v61  ;;  %2028 = vmatprep.mubr.msk.f32.mxu1 %vm2316_vm1, %v2315_v8 }
 0x36b   :  { %v385_v13 = vmul.f32 %v2242_v50, %v2226_v16  ;;  %2036 = vmatprep.subr.mxu1 %v2315_v8  ;;  %v906_v57 = vpop.permute.xlu0 %905 }
 0x36d   :  { %2029 = vmatmul.mubr.msk.f32.vlgmr.msra.gmra.mrb[6].mxu1 %vm132_vm2, %v385_v13  ;;  %v462_v53 = vadd.f32 %v385_v13, %v218_v48 }
 0x36e   :  { %v2244_v51 = vpop.eup %2243  ;;  %2037 = vmatpush3.msra.mxu1 %v554_v43  ;;  %2038 = vmatprep.mubr.msk.f32.mxu1 %vm2316_vm1, %v2315_v8 }
 0x36f   :  { %v552_v52 = vmul.f32 %v2244_v51, %v2228_v18  ;;  %2046 = vmatprep.subr.mxu1 %v2315_v8  ;;  %v1505_v51 = vlaneseq }
 0x371   :  { %2039 = vmatmul.mubr.msk.f32.vlgmr.msra.gmra.mrb[8].mxu1 %vm132_vm2, %v552_v52  ;;  %v629_v56 = vadd.f32 %v552_v52, %v462_v53  ;;  %v2580_v52 = vshrl.u32 %v1505_v51, 7 }
 0x372   :  { %v2246_v54 = vpop.eup %2245  ;;  %2047 = vmatpush3.msra.mxu1 %v721_v42  ;;  %2048 = vmatprep.mubr.msk.f32.mxu1 %vm2316_vm1, %v2315_v8 }
 0x373   :  { %v719_v55 = vmul.f32 %v2246_v54, %v2498_v20  ;;  %2056 = vmatprep.subr.mxu1 %v2315_v8  ;;  %v1507_v53 = vsub.s32 0, %v2580_v52  ;;  %v2586_v54 = vld [vmem:[%s2725_s7] sm:$0x3f] }
 0x375   :  { %2049 = vmatmul.mubr.msk.f32.vlgmr.msra.gmra.mrb[10].mxu1 %vm132_vm2, %v719_v55  ;;  %v796_v58 = vadd.f32 %v719_v55, %v629_v56  ;;  %v1508_v55 = vrot.slane %v2586_v54, %v1507_v53 }
 0x376   :  { %2057 = vmatpush3.msra.mxu1 %v906_v57  ;;  %2058 = vmatprep.mubr.msk.f32.mxu1 %vm2316_vm1, %v2315_v8 }
 0x377   :  { %2066 = vmatprep.subr.mxu1 %v2315_v8  ;;  %v814_v59 = vmul.f32 0.25, %v796_v58 }
 0x379   :  { %815 = vst.msk [vmem:[#allocation4] sm:$0xff] %vm132_vm2, %v814_v59 }
 0x398   :  { %v902_v61 = vpop.xlane.xlu1 %901 }
 0x399   :  { %2247 = vrcp.f32 %v902_v61 }
 0x39c   :  { %v1236_v62 = vpop.xlane.xlu1 %1235  ;;  %v1069_v63 = vpop.xlane.xlu0 %1068 }
 0x39d   :  { %2249 = vrcp.f32 %v1236_v62 }
 0x39e   :  { %2251 = vrcp.f32 %v1069_v63 }
 0x3a0   :  { %v1403_v0 = vpop.xlane.xlu1 %1402  ;;  %v1240_v14 = vpop.permute.xlu0 %1239 }
 0x3a1   :  { %2253 = vrcp.f32 %v1403_v0 }
 0x3a3   :  { %v2248_v1 = vpop.eup %2247 }
 0x3a4   :  { %v904_v2 = vmul.f32 %v2248_v1, %v2506_v34  ;;  %v1407_v16 = vpop.permute.xlu1 %1406 }
 0x3a6   :  { %2059 = vmatmul.mubr.msk.f32.vlgmr.msra.gmra.mrb[12].mxu1 %vm132_vm2, %v904_v2 }
 0x3a7   :  { %v2250_v3 = vpop.eup %2249  ;;  %2067 = vmatpush3.msra.mxu1 %v1073_v60  ;;  %2068 = vmatprep.mubr.msk.f32.mxu1 %vm2316_vm1, %v2315_v8 }
 0x3a8   :  { %v2252_v4 = vpop.eup %2251  ;;  %2076 = vmatprep.subr.mxu1 %v2315_v8  ;;  %v1238_v10 = vmul.f32 %v2250_v3, %v2512_v37 }
 0x3a9   :  { %v1071_v6 = vmul.f32 %v2252_v4, %v2508_v35 }
 0x3ab   :  { %v2254_v9 = vpop.eup %2253  ;;  %v1148_v11 = vadd.f32 %v1071_v6, %v904_v2  ;;  %2069 = vmatmul.mubr.msk.f32.vlgmr.msra.gmra.mrb[14].mxu1 %vm132_vm2, %v1071_v6 }
 0x3ac   :  { %v1405_v15 = vmul.f32 %v2254_v9, %v2518_v40  ;;  %2077 = vmatpush3.msra.mxu1 %v1240_v14  ;;  %2078 = vmatprep.mubr.msk.f32.mxu1 %vm2316_vm1, %v2315_v8 }
 0x3ad   :  { %2086 = vmatprep.subr.mxu1 %v2315_v8  ;;  %v1315_v12 = vadd.f32 %v1238_v10, %v1148_v11 }
 0x3af   :  { %2079 = vmatmul.mubr.msk.f32.vlgmr.msra.gmra.mrb[16].mxu1 %vm132_vm2, %v1238_v10  ;;  %v1482_v17 = vadd.f32 %v1405_v15, %v1315_v12  ;;  %v1634_v12 = vld [vmem:[%s2721_s3 + $0x8] sm:$0xff] }
 0x3b0   :  { %2087 = vmatpush3.msra.mxu1 %v1407_v16  ;;  %2088 = vmatprep.mubr.msk.f32.mxu1 %vm2316_vm1, %v2315_v8 }
 0x3b1   :  { %v1498_v18 = vmul.f32 0.25, %v1482_v17  ;;  %2157 = vmatprep.subr.bf16.mxu1 %v2156_v28  ;;  %v1635_v17 = vld [vmem:[%s2721_s3 + $0x10] sm:$0xff] }
 0x3b3   :  { %2089 = vmatmul.mubr.msk.f32.vlgmr.msra.gmra.mrb[18].mxu1 %vm132_vm2, %v1405_v15  ;;  %1500 = vst.msk [vmem:[#allocation4 + $0x8] sm:$0xff] %vm132_vm2, %v1498_v18  ;;  %v1633_v15 = vld [vmem:[%s2721_s3] sm:$0xff]  ;;  %v1636_v18 = vld [vmem:[%s2721_s3 + $0x18] sm:$0xff] }
 0x3b4   :  { %2159 = vmatpush3.bf16.msra.mxu1 %v2156_v28  ;;  %v2164_v16 = vpack.c.bf16 %v1634_v12, %v1633_v15  ;;  %v1733_v28 = vld [vmem:[%s2722_s4 + $0x30] sm:$0xff] }
 0x3b5   :  { %2161 = vmatprep.subr.bf16.mxu1 %v2160_v31  ;;  %v2184_v30 = vpack.c.bf16 %v1734_v29, %v1733_v28 }
 0x3b8   :  { %2163 = vmatpush3.bf16.msra.mxu1 %v2160_v31  ;;  %v1735_v31 = vld [vmem:[%s2722_s4 + $0x40] sm:$0xff] }
 0x3b9   :  { %2165 = vmatprep.subr.bf16.mxu1 %v2164_v16 }
 0x43c   :  { %v291_v19 = vpop.f32.mrb[4].mxu1 }
 0x43d   :  { %v2020_v20 = vpop.f32.mrb[5].mxu1 }
 0x43e   :  { %v1727_v20 = vld [vmem:[%s2722_s4] sm:$0xff] }
 0x440   :  { %v458_v21 = vpop.f32.mrb[6].mxu1 }
 0x441   :  { %798 = vrot.lane.b32.xlu0 %v458_v21, %s2328_s10  ;;  %v2030_v22 = vpop.f32.mrb[7].mxu1  ;;  %v1728_v21 = vld [vmem:[%s2722_s4 + $0x8] sm:$0xff] }
 0x442   :  { %v1729_v22 = vld [vmem:[%s2722_s4 + $0x10] sm:$0xff] }
 0x444   :  { %v625_v23 = vpop.f32.mrb[8].mxu1 }
 0x445   :  { %802 = vrot.lane.b32.xlu1 %v625_v23, %s2329_s11  ;;  %v2040_v24 = vpop.f32.mrb[9].mxu1  ;;  %v2172_v23 = vpack.c.bf16 %v1728_v21, %v1727_v20 }
 0x446   :  { %v1730_v24 = vld [vmem:[%s2722_s4 + $0x18] sm:$0xff] }
 0x447   :  { %2173 = vmatprep.subr.bf16.mxu0 %v2172_v23 }
 0x448   :  { %v792_v25 = vpop.f32.mrb[10].mxu1  ;;  %2175 = vmatpush3.bf16.msra.mxu0 %v2172_v23 }
 0x449   :  { %806 = vrot.lane.b32.xlu1 %v792_v25, %s2330_s12  ;;  %v2050_v8 = vpop.f32.mrb[11].mxu1  ;;  %v2176_v25 = vpack.c.bf16 %v1730_v24, %v1729_v22 }
 0x44a   :  { %v1731_v8 = vld [vmem:[%s2722_s4 + $0x20] sm:$0xff] }
 0x44b   :  { %2177 = vmatprep.subr.bf16.mxu0 %v2176_v25  ;;  %v2180_v27 = vpack.c.bf16 %v1732_v26, %v1731_v8 }
 0x44c   :  { %2179 = vmatpush3.bf16.msra.mxu0 %v2176_v25 }
 0x44d   :  { %2181 = vmatprep.subr.bf16.mxu0 %v2180_v27 }
 0x450   :  { %2183 = vmatpush3.bf16.msra.mxu0 %v2180_v27 }
 0x451   :  { %2185 = vmatprep.subr.bf16.mxu0 %v2184_v30 }
 0x454   :  { %2187 = vmatpush3.bf16.msra.mxu0 %v2184_v30 }
 0x479   :  { %v977_v32 = vpop.f32.mrb[12].mxu1 }
 0x47a   :  { %v2060_v33 = vpop.f32.mrb[13].mxu1 }
 0x47e   :  { %v1144_v34 = vpop.f32.mrb[14].mxu1 }
 0x47f   :  { %1484 = vrot.lane.b32.xlu0 %v1144_v34, %s2328_s10  ;;  %v2070_v35 = vpop.f32.mrb[15].mxu1  ;;  %v1737_v34 = vld [vmem:[%s2722_s4 + $0x50] sm:$0xff] }
 0x480   :  { %v1738_v35 = vld [vmem:[%s2722_s4 + $0x58] sm:$0xff] }
 0x482   :  { %v1311_v36 = vpop.f32.mrb[16].mxu1 }
 0x483   :  { %1488 = vrot.lane.b32.xlu0 %v1311_v36, %s2329_s11  ;;  %v2080_v37 = vpop.f32.mrb[17].mxu1  ;;  %v2192_v36 = vpack.c.bf16 %v1738_v35, %v1737_v34 }
 0x484   :  { %v1739_v37 = vld [vmem:[%s2722_s4 + $0x60] sm:$0xff] }
 0x486   :  { %v1478_v38 = vpop.f32.mrb[18].mxu1 }
 0x487   :  { %1492 = vrot.lane.b32.xlu1 %v1478_v38, %s2330_s12  ;;  %v2090_v39 = vpop.f32.mrb[19].mxu1  ;;  %v1740_v38 = vld [vmem:[%s2722_s4 + $0x68] sm:$0xff] }
 0x488   :  { %v2196_v39 = vpack.c.bf16 %v1740_v38, %v1739_v37 }
 0x4b3   :  { %v799_v40 = vpop.permute.xlu0 %798 }
 0x4b4   :  { %v809_v42 = vsel %vm132_vm2, %v291_v19, %v799_v40  ;;  %v2168_v19 = vpack.c.bf16 %v1636_v18, %v1635_v17 }
 0x4b7   :  { %v803_v41 = vpop.permute.xlu1 %802 }
 0x4b8   :  { %v811_v43 = vsel %vm810_vm3, %v809_v42, %v803_v41 }
 0x4bb   :  { %v807_v44 = vpop.permute.xlu1 %806 }
 0x4bc   :  { %v813_v45 = vsel %vm812_vm4, %v811_v43, %v807_v44 }
 0x4bd   :  { %2099 = vmatprep.mubr.msk.f32.mxu1 %vm47_vm0, %v813_v45 }
 0x4f1   :  { %v1485_v46 = vpop.permute.xlu0 %1484 }
 0x4f2   :  { %v1495_v48 = vsel %vm132_vm2, %v977_v32, %v1485_v46  ;;  %v1736_v32 = vld [vmem:[%s2722_s4 + $0x48] sm:$0xff]  ;;  %v1621_v46 = vsub.s32 2, %v2580_v52 }
 0x4f3   :  { %v2188_v33 = vpack.c.bf16 %v1736_v32, %v1735_v31 }
 0x4f5   :  { %v1489_v47 = vpop.permute.xlu0 %1488  ;;  %2189 = vmatprep.subr.bf16.mxu0 %v2188_v33 }
 0x4f6   :  { %v1496_v49 = vsel %vm810_vm3, %v1495_v48, %v1489_v47  ;;  %2191 = vmatpush3.bf16.msra.mxu0 %v2188_v33  ;;  %v1627_v47 = vsub.s32 3, %v2580_v52  ;;  %v1622_v48 = vrot.slane %v2586_v54, %v1621_v46 }
 0x4f7   :  { %2193 = vmatprep.subr.bf16.mxu0 %v2192_v36 }
 0x4f9   :  { %v1493_v50 = vpop.permute.xlu1 %1492 }
 0x4fa   :  { %v1497_v13 = vsel %vm812_vm4, %v1496_v49, %v1493_v50  ;;  %2195 = vmatpush3.bf16.msra.mxu0 %v2192_v36 }
 0x4fb   :  { %2100 = vmatmul.mubr.msk.f32.vlgmr.msra.gmra.mrb[20].mxu1 %vm47_vm0, %v1497_v13  ;;  %2197 = vmatprep.subr.bf16.mxu0 %v2196_v39  ;;  %v1628_v13 = vrot.slane %v2586_v54, %v1627_v47 }
 0x4fc   :  { %2167 = vmatpush3.bf16.msra.mxu1 %v2164_v16 }
 0x4fd   :  { %2169 = vmatprep.subr.bf16.mxu1 %v2168_v19 }
 0x4fe   :  { %2199 = vmatpush3.bf16.msra.mxu0 %v2196_v39 }
 0x500   :  { %2171 = vmatpush3.bf16.msra.mxu1 %v2168_v19 }
 0x5ce   :  { %v2101_v56 = vpop.f32.mrb[20].mxu1 }
 0x5cf   :  { %v1587_v57 = vadd.f32 %v2101_v56, %v1508_v55  ;;  %v1581_v58 = vpop.f32.mrb[21].mxu1 }
 0x5d0   :  { %v1582_v59 = vadd.f32 %v1581_v58, %v1508_v55 }
 0x5d1   :  { %v1591_v60 = vadd.f32 %v1587_v57, %v2406_v7 }
 0x5d2   :  { %v1590_v61 = vadd.f32 %v1582_v59, %v2399_v5 }
 0x5d3   :  { %v1595_v62 = vsel %vm47_vm0, %v1591_v60, 0.0 }
 0x5d4   :  { %1596 = vadd.xlane.f32.xlu1 %v1595_v62  ;;  %v1592_v63 = vsel %vm47_vm0, %v1590_v61, 0.0  ;;  %v1742_v62 = vld [vmem:[%s2722_s4 + $0x78] sm:$0xff] }
 0x5d5   :  { %1593 = vadd.xlane.f32.xlu0 %v1592_v63 }
 0x661   :  { %v1597_v0 = vpop.xlane.xlu1 %1596 }
 0x662   :  { %v1600_v1 = vmul.f32 0.03125, %v1597_v0  ;;  %v1594_v2 = vpop.xlane.xlu0 %1593 }
 0x663   :  { %v1599_v3 = vmul.f32 0.03125, %v1594_v2 }
 0x664   :  { %v2593_v4 = vsub.f32 %v1591_v60, %v1600_v1 }
 0x665   :  { %v2595_v6 = vsub.f32 %v1590_v61, %v1599_v3  ;;  %v1741_v61 = vld [vmem:[%s2722_s4 + $0x70] sm:$0xff]  ;;  %s2331_s4 = smov [#allocation4]  }
 0x666   :  { %v1604_v11 = vmul.f32 %v2593_v4, %v2593_v4  ;;  %v2200_v63 = vpack.c.bf16 %v1742_v62, %v1741_v61 }
 0x667   :  { %v1603_v9 = vmul.f32 %v2595_v6, %v2595_v6 }
 0x668   :  { %v1608_v14 = vsel %vm47_vm0, %v1604_v11, 0.0  ;;  %2201 = vmatprep.subr.bf16.mxu0 %v2200_v63 }
 0x669   :  { %v1605_v10 = vsel %vm47_vm0, %v1603_v9, 0.0  ;;  %2203 = vmatpush3.bf16.msra.mxu0 %v2200_v63 }
 0x66a   :  { %1606 = vadd.xlane.f32.xlu0 %v1605_v10 }
 0x66e   :  { %1609 = vadd.xlane.f32.xlu0 %v1608_v14 }
 0x6f7   :  { %v1607_v40 = vpop.xlane.xlu0 %1606 }
 0x6f8   :  { %v1611_v41 = vmul.f32 0.03125, %v1607_v40 }
 0x6fa   :  { %v1613_v42 = vadd.f32 1e-05, %v1611_v41 }
 0x6fb   :  { %v1610_v43 = vpop.xlane.xlu0 %1609 }
 0x6fc   :  { %2255 = vrsqrt.f32 %v1613_v42  ;;  %v1612_v44 = vmul.f32 0.03125, %v1610_v43 }
 0x6fe   :  { %v1614_v45 = vadd.f32 1e-05, %v1612_v44 }
 0x700   :  { %2257 = vrsqrt.f32 %v1614_v45 }
 0x706   :  { %v2256_v49 = vpop.eup %2255 }
 0x707   :  { %v1617_v50 = vmul.f32 %v2256_v49, %v2595_v6  ;;  %v1745_v6 = vsub.s32 1, %v2580_v52 }
 0x709   :  { %v1623_v51 = vmul.f32 %v1622_v48, %v1617_v50  ;;  %v1746_v9 = vrot.slane %v2586_v54, %v1745_v6 }
 0x70a   :  { %v2258_v53 = vpop.eup %2257 }
 0x70b   :  { %v1618_v55 = vmul.f32 %v2258_v53, %v2593_v4  ;;  %v1629_v56 = vadd.f32 %v1628_v13, %v1623_v51 }
 0x70d   :  { %v1624_v57 = vmul.f32 %v1622_v48, %v1618_v55  ;;  %v1631_v58 = vadd.f32 %v1629_v56, %v2399_v5  ;;  %v1929_v5 = vld [vmem:[%s2724_s6] ss:$0 sm:$0xff]  ;;  %s1885_s6 = sshll.u32 %s2331_s4, 4  ;;  %s1886_s6 = int_to_ptr.vmem [resolvable:$true] %s1885_s6 }
 0x70e   :  { %s2267_s13 = scalar_lea.vmem %s1886_s6, 256  ;;  %p2272_p1 = scmp.lt.s32.totalorder %s1886_s6, %s1886_s6 }
 0x70f   :  { %v1630_v59 = vadd.f32 %v1628_v13, %v1624_v57  ;;  %2110 = vmatprep.mubr.msk.f32.mxu1 %vm47_vm0, %v1631_v58  ;;  %p2268_p0 = scmp.ne.s32.totalorder %s1886_s6, %s2267_s13  ;;  %p2273_p2 = scmp.lt.s32.totalorder %s2267_s13, %s2267_s13 }
 0x711   :  { %v1632_v60 = vadd.f32 %v1630_v59, %v2406_v7  ;;  %p2274_p3 = por %p2273_p2, %p2272_p1 }
 0x713   :  { %2111 = vmatmul.mubr.msk.f32.vlgmr.msra.gmra.mrb[22].mxu1 %vm47_vm0, %v1632_v60  ;;  %p2275_p4 = pnand %p2274_p3, %p2268_p0 }
 0x7e6   :  { %v2112_v0 = vpop.f32.mrb[22].mxu1 }
 0x7e7   :  { %v1722_v1 = vadd.f32 %v2112_v0, %v1929_v5  ;;  %v1716_v7 = vpop.f32.mrb[23].mxu1 }
 0x7e8   :  { %v1717_v2 = vadd.f32 %v1929_v5, %v1716_v7 }
 0x7e9   :  { %v1726_v4 = vmax.f32 %v1722_v1, 0.0 }
 0x7ea   :  { %v1725_v3 = vmax.f32 %v1717_v2, 0.0 }
 0x7ec   :  { %2145 = vmatprep.mubr.f32.mxu0 %v1725_v3 }
 0x7ed   :  { %2146 = vmatmul.mubr.f32.vlgmr.msra.gmra.mrb[14].mxu0 %v1726_v4 }
 0x8c0   :  { %v2147_v10 = vpop.f32.mrb[14].mxu0 }
 0x8c1   :  { %v1819_v11 = vadd.f32 %v2147_v10, %v1746_v9  ;;  %v1813_v14 = vpop.f32.mrb[15].mxu0 }
 0x8c2   :  { %v1814_v15 = vadd.f32 %v1813_v14, %v1746_v9 }
 0x8c3   :  { %v1823_v12 = vadd.f32 %v1819_v11, %v1632_v60 }
 0x8c4   :  { %v1822_v16 = vadd.f32 %v1814_v15, %v1631_v58 }
 0x8c5   :  { %2259 = vtanh.f32 %v1823_v12 }
 0x8c6   :  { %2261 = vtanh.f32 %v1822_v16 }
 0x8cf   :  { %v2260_v17 = vpop.eup %2259 }
 0x8d0   :  { %v2262_v18 = vpop.eup %2261  ;;  %v1827_v19 = vadd.f32 %v2260_v17, %v1630_v59 }
 0x8d1   :  { %v1826_v20 = vadd.f32 %v2262_v18, %v1629_v56 }
 0x8d2   :  { %v1831_v21 = vsel %vm47_vm0, %v1827_v19, 0.0 }
 0x8d3   :  { %1832 = vadd.xlane.f32.xlu0 %v1831_v21  ;;  %v1828_v22 = vsel %vm47_vm0, %v1826_v20, 0.0 }
 0x8d4   :  { %1829 = vadd.xlane.f32.xlu1 %v1828_v22 }
 0x960   :  { %v1833_v23 = vpop.xlane.xlu0 %1832 }
 0x961   :  { %v1835_v24 = vmul.f32 0.03125, %v1833_v23  ;;  %v1830_v25 = vpop.xlane.xlu1 %1829 }
 0x962   :  { %v1834_v8 = vmul.f32 0.03125, %v1830_v25 }
 0x963   :  { %v1837_v26 = vsub.f32 %v1827_v19, %v1835_v24 }
 0x964   :  { %v1836_v27 = vsub.f32 %v1826_v20, %v1834_v8 }
 0x965   :  { %v1839_v28 = vmul.f32 %v1837_v26, %v1837_v26 }
 0x966   :  { %v1838_v29 = vmul.f32 %v1836_v27, %v1836_v27 }
 0x967   :  { %v1843_v30 = vsel %vm47_vm0, %v1839_v28, 0.0 }
 0x968   :  { %1844 = vadd.xlane.f32.xlu0 %v1843_v30  ;;  %v1840_v31 = vsel %vm47_vm0, %v1838_v29, 0.0 }
 0x969   :  { %1841 = vadd.xlane.f32.xlu1 %v1840_v31 }
 0x96a   :  { %2278 = shalt.err (!%p2275_p4)
}
 0x96b   :  { %s2279_s16 = scalar_lea.hbm %s2727_s9, 256 }
 0x96c   :  { %p2280_p5 = scmp.ne.s32.totalorder %s2727_s9, %s2279_s16  ;;  %p2283_p6 = scmp.lt.u32.totalorder %s2279_s16, %s2727_s9 }
 0x96e   :  { %p2285_p7 = pnand %p2283_p6, %p2280_p5 }
 0x970   :  { %2288 = shalt.err (!%p2285_p7)
}
 0x971   :  { %s2332_s2 = smov 128   ;;  %v1856_v38 = vsub.s32 4, %v2580_v52  ;;  %v1862_v39 = vsub.s32 5, %v2580_v52 }
 0x972   :  { %1891 = dma.vmem_to_hbm [thread:$0]  %s1886_s6, 256, %s2727_s9, [#allocation5], %s2332_s2, %s2332_s2, %s2328_s10  }
 0x973   :  { %v1857_v40 = vrot.slane %v2586_v54, %v1856_v38  ;;  %v1863_v44 = vrot.slane %v2586_v54, %v1862_v39  ;;  %s2333_s9 = smov [#allocation2]  }
 0x974   :  { %s1873_s21 = sshll.u32 %s2333_s9, 4  ;;  %s1874_s21 = int_to_ptr.vmem [resolvable:$true] %s1873_s21 }
 0x975   :  { %s2289_s0 = scalar_lea.vmem %s1874_s21, 256  ;;  %p2294_p9 = scmp.lt.s32.totalorder %s1874_s21, %s1874_s21 }
 0x976   :  { %p2290_p8 = scmp.ne.s32.totalorder %s1874_s21, %s2289_s0  ;;  %p2295_p10 = scmp.lt.s32.totalorder %s2289_s0, %s2289_s0 }
 0x978   :  { %p2296_p11 = por %p2295_p10, %p2294_p9 }
 0x97a   :  { %p2297_p12 = pnand %p2296_p11, %p2290_p8 }
 0x9f5   :  { %v1845_v32 = vpop.xlane.xlu0 %1844 }
 0x9f6   :  { %v1847_v33 = vmul.f32 0.03125, %v1845_v32  ;;  %v1842_v34 = vpop.xlane.xlu1 %1841 }
 0x9f7   :  { %v1846_v35 = vmul.f32 0.03125, %v1842_v34 }
 0x9f8   :  { %v1849_v36 = vadd.f32 1e-05, %v1847_v33 }
 0x9f9   :  { %v1848_v37 = vadd.f32 1e-05, %v1846_v35 }
 0x9fa   :  { %2263 = vrsqrt.f32 %v1849_v36 }
 0x9fb   :  { %2265 = vrsqrt.f32 %v1848_v37 }
 0xa04   :  { %v2264_v41 = vpop.eup %2263 }
 0xa05   :  { %v2266_v42 = vpop.eup %2265  ;;  %v1853_v43 = vmul.f32 %v2264_v41, %v1837_v26 }
 0xa06   :  { %v1852_v45 = vmul.f32 %v2266_v42, %v1836_v27 }
 0xa07   :  { %v1859_v46 = vmul.f32 %v1857_v40, %v1853_v43 }
 0xa08   :  { %v1858_v47 = vmul.f32 %v1857_v40, %v1852_v45 }
 0xa09   :  { %v1865_v48 = vadd.f32 %v1863_v44, %v1859_v46 }
 0xa0a   :  { %v1864_v49 = vadd.f32 %v1863_v44, %v1858_v47 }
 0xa0b   :  { %1867 = vst.msk [vmem:[#allocation2 + $0x8] sm:$0xff] %vm47_vm0, %v1865_v48 }
 0xa0c   :  { %1866 = vst.msk [vmem:[#allocation2] sm:$0xff] %vm47_vm0, %v1864_v49 }
 0xa0d   :  { %2300 = shalt.err (!%p2297_p12)
}
 0xa0e   :  { %s2301_s24 = scalar_lea.hbm %s2726_s8, 256 }
 0xa0f   :  { %p2302_p13 = scmp.ne.s32.totalorder %s2726_s8, %s2301_s24  ;;  %p2305_p0 = scmp.lt.u32.totalorder %s2301_s24, %s2726_s8 }
 0xa11   :  { %p2307_p1 = pnand %p2305_p0, %p2302_p13 }
 0xa13   :  { %2310 = shalt.err (!%p2307_p1)
}
 0xa14   :  { %1879 = dma.vmem_to_hbm [thread:$0]  %s1874_s21, 256, %s2726_s8, [#allocation3], %s2332_s2, %s2332_s2, %s2328_s10  }
 0xa15   :  { %2311 = dma.done.wait [#allocation3], 256  }
 0xa16   :  { %2312 = vsyncadd [#allocation3], 4294967040 }
 0xa17   :  { %2313 = dma.done.wait [#allocation5], 256  }
 0xa18   :  { %2314 = vsyncadd [#allocation5], 4294967040 }
 0xa19   :  { %1898 = vsyncpa [#allocation3], 1 }
 0xa1a   :  { %1899 = vsyncpa [#allocation5], 1 }

</bundles_post_ra>
